<compile_context>
chip_gen: v6e
topology: v6e:2x2x1
jax: 0.10.0
libtpu: 0.0.40
codegen_flags: <defaults>
</compile_context>

<pallas_src>
import functools

import jax
import jax.numpy as jnp
from jax import lax
from jax.experimental import pallas as pl
from jax.experimental.pallas import tpu as pltpu


# --------------------------- fused forward kernel ---------------------------

def _fused_attn_kernel(x_ref, wqkv_ref, wproj_ref, bproj_ref, mix_ref, o_ref, *,
                       num_heads, batches_per_step, seq_len, scale, eps):
    # x_ref:     (R, C)    VMEM   R = batches_per_step * seq_len stacked rows
    # wqkv_ref:  (C, 3C)   VMEM   qkv weight (transposed to in x out), resident
    # wproj_ref: (C, C)    VMEM   proj weight (in x out), resident
    # bproj_ref: (1, C)    VMEM   proj bias
    # mix_ref:   (2H,)     SMEM   [alpha_0..alpha_{H-1}, beta_0..beta_{H-1}],
    #                             beta_h = (1 - alpha_h) / N (folded scalattn scale)
    # o_ref:     (R, C)    VMEM   output rows for this grid step
    R, C = x_ref.shape
    d = C // num_heads
    N = seq_len

    # One QKV matmul over the whole stacked row slab: (R, C) @ (C, 3C), f32 acc on MXU.
    qkv = jnp.dot(x_ref[...], wqkv_ref[...], preferred_element_type=jnp.float32)

    # Per-(batch, head) ReLU-normalized attention mixed with scaled attention.
    # PyTorch qkv feature layout is [3, H, d] flattened, so for head h:
    #   q = qkv[:, h*d:(h+1)*d], k = qkv[:, C + h*d:...], v = qkv[:, 2C + h*d:...]
    # Scores must stay block-diagonal in the batch, so slice rows per batch.
    row_blocks = []
    for b in range(batches_per_step):
        r0 = b * N
        head_outs = []
        for h in range(num_heads):
            lo = h * d
            q = qkv[r0:r0 + N, lo:lo + d]
            k = qkv[r0:r0 + N, C + lo:C + lo + d]
            v = qkv[r0:r0 + N, 2 * C + lo:2 * C + lo + d]

            # s = q @ k^T * scale, contracting last dims (no explicit transpose).
            s = lax.dot_general(
                q, k, dimension_numbers=(((1,), (1,)), ((), ())),
                preferred_element_type=jnp.float32) * scale          # (N, N)

            a = jnp.maximum(s, 0.0)                                  # ReLU
            # Exact division kept (eps-sum rows make approx reciprocal risky
            # for the 1e-4 tolerance); compute is not the bottleneck here.
            a = a / (jnp.sum(a, axis=-1, keepdims=True) + eps)       # row-normalize

            alpha = mix_ref[h]                                       # SMEM scalar reads
            beta = mix_ref[num_heads + h]                            # = (1 - alpha) / N
            a = alpha * a + beta * s                                 # folded scalattn mix

            # Head output kept in registers; concatenated below (no VMEM scratch,
            # no masked 8-lane partial stores).
            head_outs.append(jnp.dot(a, v, preferred_element_type=jnp.float32))  # (N, d)

        row_blocks.append(jnp.concatenate(head_outs, axis=-1))       # (N, C)

    merged = (jnp.concatenate(row_blocks, axis=0)
              if batches_per_step > 1 else row_blocks[0])            # (R, C), in registers

    # Output projection: (R, C) @ (C, C) + bias -> single lane-aligned store.
    out = jnp.dot(merged, wproj_ref[...],
                  preferred_element_type=jnp.float32) + bproj_ref[...]
    o_ref[...] = out.astype(o_ref.dtype)


# ------------------------------ wrapper --------------------------------------

def _batches_per_step(B, N, max_rows=512):
    """How many batches to stack per grid step.

    Stack batches so the QKV/proj matmuls see tall row slabs (dominant win at
    small N), but (a) keep >= 2 grid steps whenever B allows so v7x's two
    TensorCores both get work, and (b) cap rows/step so the (rows, 3C) qkv
    intermediate stays small at larger shapes.
    """
    best = 1
    for bg in range(1, B + 1):
        if B % bg or bg * N > max_rows:
            continue
        if B >= 2 and B // bg < 2:
            continue  # keep at least 2 (parallel) steps for v7x megacore
        best = bg
    return best


def attention_forward(x, params, num_heads):
    """Fused Attention forward: one pallas_call, batches stacked along rows."""
    B, N, C = x.shape
    assert C % num_heads == 0, "dim must be divisible by num_heads"
    d = C // num_heads
    scale = d ** (-0.5)
    eps = 1e-8

    BG = _batches_per_step(B, N)
    R = BG * N                                   # rows per grid step
    if R != B * N and R % 8 != 0:                # (8,128) sublane rule guard
        BG, R = B, B * N                         # fall back to one fully-stacked step
    G = B // BG                                  # grid steps

    # Contiguous reshape (free): rows of x2 are (batch, token) in order.
    x2 = x.reshape(B * N, C)

    # PyTorch Linear weights are (out, in); transpose once in the wrapper so the
    # kernel does plain (rows, in) @ (in, out) matmuls.
    w_qkv_t = params["w_qkv"].T                           # (C, 3C)
    w_proj_t = params["w_proj"].T                         # (C, C)
    b_proj = params["b_proj"].reshape(1, C)               # (1, C)

    # Fold the mixing scalars: mix = alpha * a + beta * s with beta = (1-alpha)/N.
    alpha = params["alpha"].reshape(num_heads).astype(jnp.float32)
    beta = (1.0 - alpha) / N
    mix = jnp.concatenate([alpha, beta])                  # (2H,) SMEM scalars

    kernel = functools.partial(
        _fused_attn_kernel, num_heads=num_heads, batches_per_step=BG,
        seq_len=N, scale=scale, eps=eps)

    out2 = pl.pallas_call(
        kernel,
        out_shape=jax.ShapeDtypeStruct((B * N, C), x.dtype),
        grid=(G,),
        in_specs=[
            pl.BlockSpec((R, C), lambda g: (g, 0)),            # stacked token rows
            pl.BlockSpec((C, 3 * C), lambda g: (0, 0)),         # qkv weight (resident)
            pl.BlockSpec((C, C), lambda g: (0, 0)),             # proj weight (resident)
            pl.BlockSpec((1, C), lambda g: (0, 0)),             # proj bias
            pl.BlockSpec(memory_space=pltpu.MemorySpace.SMEM),  # alpha/beta scalars
        ],
        out_specs=pl.BlockSpec((R, C), lambda g: (g, 0)),
        compiler_params=pltpu.CompilerParams(
            dimension_semantics=("parallel",),     # v7x: shard steps over 2 TCs
            vmem_limit_bytes=32 * 1024 * 1024,     # explicit cap (v7x scoped default)
        ),
    )(x2, w_qkv_t, w_proj_t, b_proj, mix)

    return out2.reshape(B, N, C)


# ------------------------------ reference -----------------------------------

def reference_forward(x, params, num_heads):
    B, N, C = x.shape
    d = C // num_heads
    scale = d ** (-0.5)
    qkv = (x @ params["w_qkv"].T).reshape(B, N, 3, num_heads, d).transpose(2, 0, 3, 1, 4)
    q, k, v = qkv[0], qkv[1], qkv[2]
    attn = jnp.einsum("bhnd,bhmd->bhnm", q, k) * scale
    scalattn = attn / N
    a = jnp.maximum(attn, 0.0)
    a = a / (jnp.sum(a, axis=-1, keepdims=True) + 1e-8)
    a = params["alpha"] * a + (1 - params["alpha"]) * scalattn
    o = jnp.einsum("bhnm,bhmd->bhnd", a, v).transpose(0, 2, 1, 3).reshape(B, N, C)
    return o @ params["w_proj"].T + params["b_proj"]


# --------------------------------- main --------------------------------------

if __name__ == "__main__":
    B, N, C, H = 2, 16, 64, 8  # small shapes; d = C // H = 8
    key = jax.random.PRNGKey(0)
    kx, kqkv, kproj, kb, ka = jax.random.split(key, 5)

    x = jax.random.normal(kx, (B, N, C), dtype=jnp.float32)

    params = {
        # PyTorch Linear weight layout: (out_features, in_features)
        "w_qkv": jax.random.normal(kqkv, (3 * C, C), dtype=jnp.float32) * (1.0 / C**0.5),
        "w_proj": jax.random.normal(kproj, (C, C), dtype=jnp.float32) * (1.0 / C**0.5),
        "b_proj": jax.random.normal(kb, (C,), dtype=jnp.float32) * 0.01,
        # module initializes alpha to 1.0; perturb slightly so the mix path is tested.
        "alpha": jnp.ones((1, H, 1, 1), dtype=jnp.float32)
                 + 0.1 * jax.random.normal(ka, (1, H, 1, 1), dtype=jnp.float32),
        # self.E / self.kk exist in __init__ but are unused by forward (the
        # LinFormer branch is commented out in the PyTorch source).
        "E": jnp.zeros((1, 1, 77, 65), dtype=jnp.float32),
    }

    out = attention_forward(x, params, num_heads=H)
    out = jax.block_until_ready(out)

    ref = reference_forward(x, params, num_heads=H)
    assert out.shape == (B, N, C)
    assert jnp.allclose(out, ref, atol=1e-4, rtol=1e-4), "mismatch vs reference"

    print("KERNEL_OK")
</pallas_src>

<mosaic_0001>
module attributes {stable_mosaic.version = 11 : i64} {
  func.func @_fused_attn_kernel(%arg0: i32, %arg1: memref<16x64xf32, #tpu.memory_space<vmem>>, %arg2: memref<64x192xf32, #tpu.memory_space<vmem>>, %arg3: memref<64x64xf32, #tpu.memory_space<vmem>>, %arg4: memref<1x64xf32, #tpu.memory_space<vmem>>, %arg5: memref<16xf32, #tpu.memory_space<smem>>, %arg6: memref<16x64xf32, #tpu.memory_space<vmem>>) attributes {dimension_semantics = [#tpu.dimension_semantics<parallel>], iteration_bounds = array<i64: 2>, scalar_prefetch = 0 : i64, scratch_operands = 0 : i64, tpu.core_type = #tpu.core_type<tc>, window_params = [{transform_indices = @transform_0, window_bounds = array<i64: 16, 64>}, {pipeline_mode = #tpu.pipeline_mode<synchronous>, transform_indices = @transform_1, window_bounds = array<i64: 64, 192>}, {pipeline_mode = #tpu.pipeline_mode<synchronous>, transform_indices = @transform_2, window_bounds = array<i64: 64, 64>}, {pipeline_mode = #tpu.pipeline_mode<synchronous>, transform_indices = @transform_3, window_bounds = array<i64: 1, 64>}, {transform_indices = @transform_4, window_bounds = array<i64: 16>}, {transform_indices = @transform_5, window_bounds = array<i64: 16, 64>}]} {
    %c0 = arith.constant 0 : index
    %c0_0 = arith.constant 0 : index
    %0 = vector.load %arg1[%c0, %c0_0] : memref<16x64xf32, #tpu.memory_space<vmem>>, vector<16x64xf32>
    %c0_1 = arith.constant 0 : index
    %c0_2 = arith.constant 0 : index
    %1 = vector.load %arg2[%c0_1, %c0_2] : memref<64x192xf32, #tpu.memory_space<vmem>>, vector<64x192xf32>
    %cst = arith.constant dense<0.000000e+00> : vector<16x192xf32>
    %2 = tpu.matmul %0, %1, %cst {dimension_numbers = #tpu.dot_dimension_numbers<[1], [0], [0], [1], [0, 0, 1, 1], [], []>} : vector<16x64xf32>, vector<64x192xf32>, vector<16x192xf32> -> vector<16x192xf32>
    %3 = vector.extract_strided_slice %2 {offsets = [0, 0], sizes = [16, 8], strides = [1, 1]} : vector<16x192xf32> to vector<16x8xf32>
    %4 = vector.extract_strided_slice %2 {offsets = [0, 64], sizes = [16, 8], strides = [1, 1]} : vector<16x192xf32> to vector<16x8xf32>
    %5 = vector.extract_strided_slice %2 {offsets = [0, 128], sizes = [16, 8], strides = [1, 1]} : vector<16x192xf32> to vector<16x8xf32>
    %cst_3 = arith.constant dense<0.000000e+00> : vector<16x16xf32>
    %6 = tpu.matmul %3, %4, %cst_3 {dimension_numbers = #tpu.dot_dimension_numbers<[1], [1], [0], [0], [0, 0, 1, 0], [], []>} : vector<16x8xf32>, vector<16x8xf32>, vector<16x16xf32> -> vector<16x16xf32>
    %cst_4 = arith.constant 0.353553385 : f32
    %7 = vector.broadcast %cst_4 : f32 to vector<16x16xf32>
    %8 = arith.mulf %6, %7 : vector<16x16xf32>
    %cst_5 = arith.constant 0.000000e+00 : f32
    %9 = vector.broadcast %cst_5 : f32 to vector<16x16xf32>
    %10 = arith.maximumf %8, %9 : vector<16x16xf32>
    %cst_6 = arith.constant dense<0.000000e+00> : vector<16xf32>
    %11 = vector.multi_reduction <add>, %10, %cst_6 [1] : vector<16x16xf32> to vector<16xf32>
    %12 = vector.shape_cast %11 : vector<16xf32> to vector<16x1xf32>
    %cst_7 = arith.constant 9.99999993E-9 : f32
    %13 = vector.broadcast %cst_7 : f32 to vector<16x1xf32>
    %14 = arith.addf %12, %13 : vector<16x1xf32>
    %15 = vector.broadcast %14 : vector<16x1xf32> to vector<16x16xf32>
    %16 = arith.divf %10, %15 : vector<16x16xf32>
    %c0_8 = arith.constant 0 : index
    %17 = memref.load %arg5[%c0_8] : memref<16xf32, #tpu.memory_space<smem>>
    %c8 = arith.constant 8 : index
    %18 = memref.load %arg5[%c8] : memref<16xf32, #tpu.memory_space<smem>>
    %19 = vector.broadcast %17 : f32 to vector<16x16xf32>
    %20 = arith.mulf %19, %16 : vector<16x16xf32>
    %21 = vector.broadcast %18 : f32 to vector<16x16xf32>
    %22 = arith.mulf %21, %8 : vector<16x16xf32>
    %23 = arith.addf %20, %22 : vector<16x16xf32>
    %cst_9 = arith.constant dense<0.000000e+00> : vector<16x8xf32>
    %24 = tpu.matmul %23, %5, %cst_9 {dimension_numbers = #tpu.dot_dimension_numbers<[1], [0], [0], [1], [0, 0, 1, 1], [], []>} : vector<16x16xf32>, vector<16x8xf32>, vector<16x8xf32> -> vector<16x8xf32>
    %25 = vector.extract_strided_slice %2 {offsets = [0, 8], sizes = [16, 8], strides = [1, 1]} : vector<16x192xf32> to vector<16x8xf32>
    %26 = vector.extract_strided_slice %2 {offsets = [0, 72], sizes = [16, 8], strides = [1, 1]} : vector<16x192xf32> to vector<16x8xf32>
    %27 = vector.extract_strided_slice %2 {offsets = [0, 136], sizes = [16, 8], strides = [1, 1]} : vector<16x192xf32> to vector<16x8xf32>
    %cst_10 = arith.constant dense<0.000000e+00> : vector<16x16xf32>
    %28 = tpu.matmul %25, %26, %cst_10 {dimension_numbers = #tpu.dot_dimension_numbers<[1], [1], [0], [0], [0, 0, 1, 0], [], []>} : vector<16x8xf32>, vector<16x8xf32>, vector<16x16xf32> -> vector<16x16xf32>
    %cst_11 = arith.constant 0.353553385 : f32
    %29 = vector.broadcast %cst_11 : f32 to vector<16x16xf32>
    %30 = arith.mulf %28, %29 : vector<16x16xf32>
    %cst_12 = arith.constant 0.000000e+00 : f32
    %31 = vector.broadcast %cst_12 : f32 to vector<16x16xf32>
    %32 = arith.maximumf %30, %31 : vector<16x16xf32>
    %cst_13 = arith.constant dense<0.000000e+00> : vector<16xf32>
    %33 = vector.multi_reduction <add>, %32, %cst_13 [1] : vector<16x16xf32> to vector<16xf32>
    %34 = vector.shape_cast %33 : vector<16xf32> to vector<16x1xf32>
    %cst_14 = arith.constant 9.99999993E-9 : f32
    %35 = vector.broadcast %cst_14 : f32 to vector<16x1xf32>
    %36 = arith.addf %34, %35 : vector<16x1xf32>
    %37 = vector.broadcast %36 : vector<16x1xf32> to vector<16x16xf32>
    %38 = arith.divf %32, %37 : vector<16x16xf32>
    %c1 = arith.constant 1 : index
    %39 = memref.load %arg5[%c1] : memref<16xf32, #tpu.memory_space<smem>>
    %c9 = arith.constant 9 : index
    %40 = memref.load %arg5[%c9] : memref<16xf32, #tpu.memory_space<smem>>
    %41 = vector.broadcast %39 : f32 to vector<16x16xf32>
    %42 = arith.mulf %41, %38 : vector<16x16xf32>
    %43 = vector.broadcast %40 : f32 to vector<16x16xf32>
    %44 = arith.mulf %43, %30 : vector<16x16xf32>
    %45 = arith.addf %42, %44 : vector<16x16xf32>
    %cst_15 = arith.constant dense<0.000000e+00> : vector<16x8xf32>
    %46 = tpu.matmul %45, %27, %cst_15 {dimension_numbers = #tpu.dot_dimension_numbers<[1], [0], [0], [1], [0, 0, 1, 1], [], []>} : vector<16x16xf32>, vector<16x8xf32>, vector<16x8xf32> -> vector<16x8xf32>
    %47 = vector.extract_strided_slice %2 {offsets = [0, 16], sizes = [16, 8], strides = [1, 1]} : vector<16x192xf32> to vector<16x8xf32>
    %48 = vector.extract_strided_slice %2 {offsets = [0, 80], sizes = [16, 8], strides = [1, 1]} : vector<16x192xf32> to vector<16x8xf32>
    %49 = vector.extract_strided_slice %2 {offsets = [0, 144], sizes = [16, 8], strides = [1, 1]} : vector<16x192xf32> to vector<16x8xf32>
    %cst_16 = arith.constant dense<0.000000e+00> : vector<16x16xf32>
    %50 = tpu.matmul %47, %48, %cst_16 {dimension_numbers = #tpu.dot_dimension_numbers<[1], [1], [0], [0], [0, 0, 1, 0], [], []>} : vector<16x8xf32>, vector<16x8xf32>, vector<16x16xf32> -> vector<16x16xf32>
    %cst_17 = arith.constant 0.353553385 : f32
    %51 = vector.broadcast %cst_17 : f32 to vector<16x16xf32>
    %52 = arith.mulf %50, %51 : vector<16x16xf32>
    %cst_18 = arith.constant 0.000000e+00 : f32
    %53 = vector.broadcast %cst_18 : f32 to vector<16x16xf32>
    %54 = arith.maximumf %52, %53 : vector<16x16xf32>
    %cst_19 = arith.constant dense<0.000000e+00> : vector<16xf32>
    %55 = vector.multi_reduction <add>, %54, %cst_19 [1] : vector<16x16xf32> to vector<16xf32>
    %56 = vector.shape_cast %55 : vector<16xf32> to vector<16x1xf32>
    %cst_20 = arith.constant 9.99999993E-9 : f32
    %57 = vector.broadcast %cst_20 : f32 to vector<16x1xf32>
    %58 = arith.addf %56, %57 : vector<16x1xf32>
    %59 = vector.broadcast %58 : vector<16x1xf32> to vector<16x16xf32>
    %60 = arith.divf %54, %59 : vector<16x16xf32>
    %c2 = arith.constant 2 : index
    %61 = memref.load %arg5[%c2] : memref<16xf32, #tpu.memory_space<smem>>
    %c10 = arith.constant 10 : index
    %62 = memref.load %arg5[%c10] : memref<16xf32, #tpu.memory_space<smem>>
    %63 = vector.broadcast %61 : f32 to vector<16x16xf32>
    %64 = arith.mulf %63, %60 : vector<16x16xf32>
    %65 = vector.broadcast %62 : f32 to vector<16x16xf32>
    %66 = arith.mulf %65, %52 : vector<16x16xf32>
    %67 = arith.addf %64, %66 : vector<16x16xf32>
    %cst_21 = arith.constant dense<0.000000e+00> : vector<16x8xf32>
    %68 = tpu.matmul %67, %49, %cst_21 {dimension_numbers = #tpu.dot_dimension_numbers<[1], [0], [0], [1], [0, 0, 1, 1], [], []>} : vector<16x16xf32>, vector<16x8xf32>, vector<16x8xf32> -> vector<16x8xf32>
    %69 = vector.extract_strided_slice %2 {offsets = [0, 24], sizes = [16, 8], strides = [1, 1]} : vector<16x192xf32> to vector<16x8xf32>
    %70 = vector.extract_strided_slice %2 {offsets = [0, 88], sizes = [16, 8], strides = [1, 1]} : vector<16x192xf32> to vector<16x8xf32>
    %71 = vector.extract_strided_slice %2 {offsets = [0, 152], sizes = [16, 8], strides = [1, 1]} : vector<16x192xf32> to vector<16x8xf32>
    %cst_22 = arith.constant dense<0.000000e+00> : vector<16x16xf32>
    %72 = tpu.matmul %69, %70, %cst_22 {dimension_numbers = #tpu.dot_dimension_numbers<[1], [1], [0], [0], [0, 0, 1, 0], [], []>} : vector<16x8xf32>, vector<16x8xf32>, vector<16x16xf32> -> vector<16x16xf32>
    %cst_23 = arith.constant 0.353553385 : f32
    %73 = vector.broadcast %cst_23 : f32 to vector<16x16xf32>
    %74 = arith.mulf %72, %73 : vector<16x16xf32>
    %cst_24 = arith.constant 0.000000e+00 : f32
    %75 = vector.broadcast %cst_24 : f32 to vector<16x16xf32>
    %76 = arith.maximumf %74, %75 : vector<16x16xf32>
    %cst_25 = arith.constant dense<0.000000e+00> : vector<16xf32>
    %77 = vector.multi_reduction <add>, %76, %cst_25 [1] : vector<16x16xf32> to vector<16xf32>
    %78 = vector.shape_cast %77 : vector<16xf32> to vector<16x1xf32>
    %cst_26 = arith.constant 9.99999993E-9 : f32
    %79 = vector.broadcast %cst_26 : f32 to vector<16x1xf32>
    %80 = arith.addf %78, %79 : vector<16x1xf32>
    %81 = vector.broadcast %80 : vector<16x1xf32> to vector<16x16xf32>
    %82 = arith.divf %76, %81 : vector<16x16xf32>
    %c3 = arith.constant 3 : index
    %83 = memref.load %arg5[%c3] : memref<16xf32, #tpu.memory_space<smem>>
    %c11 = arith.constant 11 : index
    %84 = memref.load %arg5[%c11] : memref<16xf32, #tpu.memory_space<smem>>
    %85 = vector.broadcast %83 : f32 to vector<16x16xf32>
    %86 = arith.mulf %85, %82 : vector<16x16xf32>
    %87 = vector.broadcast %84 : f32 to vector<16x16xf32>
    %88 = arith.mulf %87, %74 : vector<16x16xf32>
    %89 = arith.addf %86, %88 : vector<16x16xf32>
    %cst_27 = arith.constant dense<0.000000e+00> : vector<16x8xf32>
    %90 = tpu.matmul %89, %71, %cst_27 {dimension_numbers = #tpu.dot_dimension_numbers<[1], [0], [0], [1], [0, 0, 1, 1], [], []>} : vector<16x16xf32>, vector<16x8xf32>, vector<16x8xf32> -> vector<16x8xf32>
    %91 = vector.extract_strided_slice %2 {offsets = [0, 32], sizes = [16, 8], strides = [1, 1]} : vector<16x192xf32> to vector<16x8xf32>
    %92 = vector.extract_strided_slice %2 {offsets = [0, 96], sizes = [16, 8], strides = [1, 1]} : vector<16x192xf32> to vector<16x8xf32>
    %93 = vector.extract_strided_slice %2 {offsets = [0, 160], sizes = [16, 8], strides = [1, 1]} : vector<16x192xf32> to vector<16x8xf32>
    %cst_28 = arith.constant dense<0.000000e+00> : vector<16x16xf32>
    %94 = tpu.matmul %91, %92, %cst_28 {dimension_numbers = #tpu.dot_dimension_numbers<[1], [1], [0], [0], [0, 0, 1, 0], [], []>} : vector<16x8xf32>, vector<16x8xf32>, vector<16x16xf32> -> vector<16x16xf32>
    %cst_29 = arith.constant 0.353553385 : f32
    %95 = vector.broadcast %cst_29 : f32 to vector<16x16xf32>
    %96 = arith.mulf %94, %95 : vector<16x16xf32>
    %cst_30 = arith.constant 0.000000e+00 : f32
    %97 = vector.broadcast %cst_30 : f32 to vector<16x16xf32>
    %98 = arith.maximumf %96, %97 : vector<16x16xf32>
    %cst_31 = arith.constant dense<0.000000e+00> : vector<16xf32>
    %99 = vector.multi_reduction <add>, %98, %cst_31 [1] : vector<16x16xf32> to vector<16xf32>
    %100 = vector.shape_cast %99 : vector<16xf32> to vector<16x1xf32>
    %cst_32 = arith.constant 9.99999993E-9 : f32
    %101 = vector.broadcast %cst_32 : f32 to vector<16x1xf32>
    %102 = arith.addf %100, %101 : vector<16x1xf32>
    %103 = vector.broadcast %102 : vector<16x1xf32> to vector<16x16xf32>
    %104 = arith.divf %98, %103 : vector<16x16xf32>
    %c4 = arith.constant 4 : index
    %105 = memref.load %arg5[%c4] : memref<16xf32, #tpu.memory_space<smem>>
    %c12 = arith.constant 12 : index
    %106 = memref.load %arg5[%c12] : memref<16xf32, #tpu.memory_space<smem>>
    %107 = vector.broadcast %105 : f32 to vector<16x16xf32>
    %108 = arith.mulf %107, %104 : vector<16x16xf32>
    %109 = vector.broadcast %106 : f32 to vector<16x16xf32>
    %110 = arith.mulf %109, %96 : vector<16x16xf32>
    %111 = arith.addf %108, %110 : vector<16x16xf32>
    %cst_33 = arith.constant dense<0.000000e+00> : vector<16x8xf32>
    %112 = tpu.matmul %111, %93, %cst_33 {dimension_numbers = #tpu.dot_dimension_numbers<[1], [0], [0], [1], [0, 0, 1, 1], [], []>} : vector<16x16xf32>, vector<16x8xf32>, vector<16x8xf32> -> vector<16x8xf32>
    %113 = vector.extract_strided_slice %2 {offsets = [0, 40], sizes = [16, 8], strides = [1, 1]} : vector<16x192xf32> to vector<16x8xf32>
    %114 = vector.extract_strided_slice %2 {offsets = [0, 104], sizes = [16, 8], strides = [1, 1]} : vector<16x192xf32> to vector<16x8xf32>
    %115 = vector.extract_strided_slice %2 {offsets = [0, 168], sizes = [16, 8], strides = [1, 1]} : vector<16x192xf32> to vector<16x8xf32>
    %cst_34 = arith.constant dense<0.000000e+00> : vector<16x16xf32>
    %116 = tpu.matmul %113, %114, %cst_34 {dimension_numbers = #tpu.dot_dimension_numbers<[1], [1], [0], [0], [0, 0, 1, 0], [], []>} : vector<16x8xf32>, vector<16x8xf32>, vector<16x16xf32> -> vector<16x16xf32>
    %cst_35 = arith.constant 0.353553385 : f32
    %117 = vector.broadcast %cst_35 : f32 to vector<16x16xf32>
    %118 = arith.mulf %116, %117 : vector<16x16xf32>
    %cst_36 = arith.constant 0.000000e+00 : f32
    %119 = vector.broadcast %cst_36 : f32 to vector<16x16xf32>
    %120 = arith.maximumf %118, %119 : vector<16x16xf32>
    %cst_37 = arith.constant dense<0.000000e+00> : vector<16xf32>
    %121 = vector.multi_reduction <add>, %120, %cst_37 [1] : vector<16x16xf32> to vector<16xf32>
    %122 = vector.shape_cast %121 : vector<16xf32> to vector<16x1xf32>
    %cst_38 = arith.constant 9.99999993E-9 : f32
    %123 = vector.broadcast %cst_38 : f32 to vector<16x1xf32>
    %124 = arith.addf %122, %123 : vector<16x1xf32>
    %125 = vector.broadcast %124 : vector<16x1xf32> to vector<16x16xf32>
    %126 = arith.divf %120, %125 : vector<16x16xf32>
    %c5 = arith.constant 5 : index
    %127 = memref.load %arg5[%c5] : memref<16xf32, #tpu.memory_space<smem>>
    %c13 = arith.constant 13 : index
    %128 = memref.load %arg5[%c13] : memref<16xf32, #tpu.memory_space<smem>>
    %129 = vector.broadcast %127 : f32 to vector<16x16xf32>
    %130 = arith.mulf %129, %126 : vector<16x16xf32>
    %131 = vector.broadcast %128 : f32 to vector<16x16xf32>
    %132 = arith.mulf %131, %118 : vector<16x16xf32>
    %133 = arith.addf %130, %132 : vector<16x16xf32>
    %cst_39 = arith.constant dense<0.000000e+00> : vector<16x8xf32>
    %134 = tpu.matmul %133, %115, %cst_39 {dimension_numbers = #tpu.dot_dimension_numbers<[1], [0], [0], [1], [0, 0, 1, 1], [], []>} : vector<16x16xf32>, vector<16x8xf32>, vector<16x8xf32> -> vector<16x8xf32>
    %135 = vector.extract_strided_slice %2 {offsets = [0, 48], sizes = [16, 8], strides = [1, 1]} : vector<16x192xf32> to vector<16x8xf32>
    %136 = vector.extract_strided_slice %2 {offsets = [0, 112], sizes = [16, 8], strides = [1, 1]} : vector<16x192xf32> to vector<16x8xf32>
    %137 = vector.extract_strided_slice %2 {offsets = [0, 176], sizes = [16, 8], strides = [1, 1]} : vector<16x192xf32> to vector<16x8xf32>
    %cst_40 = arith.constant dense<0.000000e+00> : vector<16x16xf32>
    %138 = tpu.matmul %135, %136, %cst_40 {dimension_numbers = #tpu.dot_dimension_numbers<[1], [1], [0], [0], [0, 0, 1, 0], [], []>} : vector<16x8xf32>, vector<16x8xf32>, vector<16x16xf32> -> vector<16x16xf32>
    %cst_41 = arith.constant 0.353553385 : f32
    %139 = vector.broadcast %cst_41 : f32 to vector<16x16xf32>
    %140 = arith.mulf %138, %139 : vector<16x16xf32>
    %cst_42 = arith.constant 0.000000e+00 : f32
    %141 = vector.broadcast %cst_42 : f32 to vector<16x16xf32>
    %142 = arith.maximumf %140, %141 : vector<16x16xf32>
    %cst_43 = arith.constant dense<0.000000e+00> : vector<16xf32>
    %143 = vector.multi_reduction <add>, %142, %cst_43 [1] : vector<16x16xf32> to vector<16xf32>
    %144 = vector.shape_cast %143 : vector<16xf32> to vector<16x1xf32>
    %cst_44 = arith.constant 9.99999993E-9 : f32
    %145 = vector.broadcast %cst_44 : f32 to vector<16x1xf32>
    %146 = arith.addf %144, %145 : vector<16x1xf32>
    %147 = vector.broadcast %146 : vector<16x1xf32> to vector<16x16xf32>
    %148 = arith.divf %142, %147 : vector<16x16xf32>
    %c6 = arith.constant 6 : index
    %149 = memref.load %arg5[%c6] : memref<16xf32, #tpu.memory_space<smem>>
    %c14 = arith.constant 14 : index
    %150 = memref.load %arg5[%c14] : memref<16xf32, #tpu.memory_space<smem>>
    %151 = vector.broadcast %149 : f32 to vector<16x16xf32>
    %152 = arith.mulf %151, %148 : vector<16x16xf32>
    %153 = vector.broadcast %150 : f32 to vector<16x16xf32>
    %154 = arith.mulf %153, %140 : vector<16x16xf32>
    %155 = arith.addf %152, %154 : vector<16x16xf32>
    %cst_45 = arith.constant dense<0.000000e+00> : vector<16x8xf32>
    %156 = tpu.matmul %155, %137, %cst_45 {dimension_numbers = #tpu.dot_dimension_numbers<[1], [0], [0], [1], [0, 0, 1, 1], [], []>} : vector<16x16xf32>, vector<16x8xf32>, vector<16x8xf32> -> vector<16x8xf32>
    %157 = vector.extract_strided_slice %2 {offsets = [0, 56], sizes = [16, 8], strides = [1, 1]} : vector<16x192xf32> to vector<16x8xf32>
    %158 = vector.extract_strided_slice %2 {offsets = [0, 120], sizes = [16, 8], strides = [1, 1]} : vector<16x192xf32> to vector<16x8xf32>
    %159 = vector.extract_strided_slice %2 {offsets = [0, 184], sizes = [16, 8], strides = [1, 1]} : vector<16x192xf32> to vector<16x8xf32>
    %cst_46 = arith.constant dense<0.000000e+00> : vector<16x16xf32>
    %160 = tpu.matmul %157, %158, %cst_46 {dimension_numbers = #tpu.dot_dimension_numbers<[1], [1], [0], [0], [0, 0, 1, 0], [], []>} : vector<16x8xf32>, vector<16x8xf32>, vector<16x16xf32> -> vector<16x16xf32>
    %cst_47 = arith.constant 0.353553385 : f32
    %161 = vector.broadcast %cst_47 : f32 to vector<16x16xf32>
    %162 = arith.mulf %160, %161 : vector<16x16xf32>
    %cst_48 = arith.constant 0.000000e+00 : f32
    %163 = vector.broadcast %cst_48 : f32 to vector<16x16xf32>
    %164 = arith.maximumf %162, %163 : vector<16x16xf32>
    %cst_49 = arith.constant dense<0.000000e+00> : vector<16xf32>
    %165 = vector.multi_reduction <add>, %164, %cst_49 [1] : vector<16x16xf32> to vector<16xf32>
    %166 = vector.shape_cast %165 : vector<16xf32> to vector<16x1xf32>
    %cst_50 = arith.constant 9.99999993E-9 : f32
    %167 = vector.broadcast %cst_50 : f32 to vector<16x1xf32>
    %168 = arith.addf %166, %167 : vector<16x1xf32>
    %169 = vector.broadcast %168 : vector<16x1xf32> to vector<16x16xf32>
    %170 = arith.divf %164, %169 : vector<16x16xf32>
    %c7 = arith.constant 7 : index
    %171 = memref.load %arg5[%c7] : memref<16xf32, #tpu.memory_space<smem>>
    %c15 = arith.constant 15 : index
    %172 = memref.load %arg5[%c15] : memref<16xf32, #tpu.memory_space<smem>>
    %173 = vector.broadcast %171 : f32 to vector<16x16xf32>
    %174 = arith.mulf %173, %170 : vector<16x16xf32>
    %175 = vector.broadcast %172 : f32 to vector<16x16xf32>
    %176 = arith.mulf %175, %162 : vector<16x16xf32>
    %177 = arith.addf %174, %176 : vector<16x16xf32>
    %cst_51 = arith.constant dense<0.000000e+00> : vector<16x8xf32>
    %178 = tpu.matmul %177, %159, %cst_51 {dimension_numbers = #tpu.dot_dimension_numbers<[1], [0], [0], [1], [0, 0, 1, 1], [], []>} : vector<16x16xf32>, vector<16x8xf32>, vector<16x8xf32> -> vector<16x8xf32>
    %179 = tpu.concatenate %24, %46, %68, %90, %112, %134, %156, %178 in 1 : vector<16x8xf32>, vector<16x8xf32>, vector<16x8xf32>, vector<16x8xf32>, vector<16x8xf32>, vector<16x8xf32>, vector<16x8xf32>, vector<16x8xf32> -> vector<16x64xf32>
    %c0_52 = arith.constant 0 : index
    %c0_53 = arith.constant 0 : index
    %180 = vector.load %arg3[%c0_52, %c0_53] : memref<64x64xf32, #tpu.memory_space<vmem>>, vector<64x64xf32>
    %cst_54 = arith.constant dense<0.000000e+00> : vector<16x64xf32>
    %181 = tpu.matmul %179, %180, %cst_54 {dimension_numbers = #tpu.dot_dimension_numbers<[1], [0], [0], [1], [0, 0, 1, 1], [], []>} : vector<16x64xf32>, vector<64x64xf32>, vector<16x64xf32> -> vector<16x64xf32>
    %c0_55 = arith.constant 0 : index
    %c0_56 = arith.constant 0 : index
    %182 = vector.load %arg4[%c0_55, %c0_56] : memref<1x64xf32, #tpu.memory_space<vmem>>, vector<1x64xf32>
    %183 = vector.broadcast %182 : vector<1x64xf32> to vector<16x64xf32>
    %184 = arith.addf %181, %183 : vector<16x64xf32>
    %c0_57 = arith.constant 0 : index
    %c0_58 = arith.constant 0 : index
    %185 = vector.load %arg6[%c0_57, %c0_58] : memref<16x64xf32, #tpu.memory_space<vmem>>, vector<16x64xf32>
    tpu.vector_store %arg6[%c0_57, %c0_58], %184 {strides = array<i32>} : memref<16x64xf32, #tpu.memory_space<vmem>>, vector<16x64xf32>,
    return
  }
  func.func @transform_0(%arg0: i32) -> (i32, i32) {
    %c0_i32 = arith.constant 0 : i32
    %c0_i32_0 = arith.constant 0 : i32
    return %arg0, %c0_i32 : i32, i32
  }
  func.func @transform_1(%arg0: i32) -> (i32, i32) {
    %c0_i32 = arith.constant 0 : i32
    %c0_i32_0 = arith.constant 0 : i32
    %c0_i32_1 = arith.constant 0 : i32
    return %c0_i32, %c0_i32_0 : i32, i32
  }
  func.func @transform_2(%arg0: i32) -> (i32, i32) {
    %c0_i32 = arith.constant 0 : i32
    %c0_i32_0 = arith.constant 0 : i32
    %c0_i32_1 = arith.constant 0 : i32
    return %c0_i32, %c0_i32_0 : i32, i32
  }
  func.func @transform_3(%arg0: i32) -> (i32, i32) {
    %c0_i32 = arith.constant 0 : i32
    %c0_i32_0 = arith.constant 0 : i32
    %c0_i32_1 = arith.constant 0 : i32
    return %c0_i32, %c0_i32_0 : i32, i32
  }
  func.func @transform_4(%arg0: i32) -> i32 {
    %c0_i32 = arith.constant 0 : i32
    %c0_i32_0 = arith.constant 0 : i32
    return %c0_i32 : i32
  }
  func.func @transform_5(%arg0: i32) -> (i32, i32) {
    %c0_i32 = arith.constant 0 : i32
    %c0_i32_0 = arith.constant 0 : i32
    return %arg0, %c0_i32 : i32, i32
  }
}

</mosaic_0001>

<bundles_post_ra>
// kernel: tpu_custom_call.1
= control target key start
LH: loop header
LB: loop body
LE: loop exit
PB: predicated region body
PF: predicated region fallthrough
CT: control target
= control target key end

     0   :  { %10 = vsyncpa [#allocation3], 0  ;;  %s3429_s0 = inlined_call_operand.hbm [shape: f32[32,64], index: 0, kind: input, shape index: {}]   ;;  %s3430_s1 = inlined_call_operand.hbm [shape: f32[64,192], index: 1, kind: input, shape index: {}]   ;;  %s3431_s2 = inlined_call_operand.hbm [shape: f32[64,64], index: 2, kind: input, shape index: {}]   ;;  %s3432_s3 = inlined_call_operand.vmem [shape: f32[1,64], index: 3, kind: input, shape index: {}]   ;;  %s3433_s4 = inlined_call_operand.vmem [shape: f32[16], index: 4, kind: input, shape index: {}]   ;;  %s3434_s5 = inlined_call_operand.hbm [shape: f32[32,64], index: 5, kind: output, shape index: {}]  }
   0x1   :  { %12 = vsyncpa [#allocation3 + $0x1], 0 }
   0x2   :  { %13 = vsyncpa [#allocation7], 0 }
   0x3   :  { %14 = vsyncpa [#allocation5], 0 }
   0x4   :  { %15 = vsyncpa [#allocation4], 0 }
   0x5   :  { %17 = vsyncpa [#allocation4 + $0x1], 0  ;;  %s2959_s18 = smov 0   ;;  %s2961_s19 = smov 0  }
   0x6   :  { %s2963_s20 = smov 0   ;;  %s2965_s21 = smov 0  }
   0x7 LB: > { %s2980_s22 = sadd.s32 4294967295, %s2901_s21   ;;  %s2309_s23 = sadd.s32 4294967294, %s2901_s21   ;;  %s2901_s21 = sphi %s2965_s21, %s3460_s21   ;;  %s2897_s20 = sphi %s2963_s20, %s3459_s20   ;;  %s2893_s19 = sphi %s2961_s19, %s3458_s19   ;;  %s2889_s18 = sphi %s2959_s18, %s3457_s18  }
   0x8   : > { %p43_p0 = scmp.ne.s32.totalorder %s2893_s19, %s2889_s18  ;;  %p3435_p1 = scmp.eq.s32.totalorder %s2980_s22, 0 }
   0x9   : > { %p157_p3 = scmp.eq.s32.totalorder %s2309_s23, 1  ;;  %p2310_p5 = scmp.ge.s32.totalorder %s2901_s21, 1 }
   0xa   : > { %p2989_p4 = por %p3435_p1, %p43_p0  ;;  %p164_p7 = scmp.lt.s32.totalorder %s2901_s21, 3 }
   0xb   : > { %p2994_p6 = por %p157_p3, %p43_p0  ;;  %s2903_s27 = smov [#allocation6]  }
   0xc   : > { %s3440_s24 = scalar_select %p2989_p4, 1, 0 }
   0xd   : > { %s3441_s25 = scalar_select %p2994_p6, 1, 0 }
   0xe   : > { %p2999_p8 = pnand %p2310_p5, %p164_p7  ;;  %s176_s28 = sshll.u32 %s2903_s27, 4  ;;  %s177_s28 = int_to_ptr.vmem [resolvable:$true] %s176_s28 }
   0xf   : > { %s2904_s30 = smov [#allocation8]   ;;  %s2745_s7 = scalar_lea.vmem %s177_s28, 2048 }
  0x10   : > { %s3442_s26 = scalar_select %p2999_p8, 1, 0 }
  0x11   : > { %p2620_p9 = pneg %p2999_p8  ;;  %s189_s6 = sshll.u32 %s2904_s30, 4  ;;  %s190_s6 = int_to_ptr.vmem [resolvable:$true] %s189_s6 }
  0x12   : > { %p2746_p13 = scmp.ne.s32.totalorder %s177_s28, %s2745_s7  ;;  %p2753_p5 = scmp.lt.s32.totalorder %s177_s28, %s177_s28 }
  0x13   : > { %p3008_p11 = pnand %p2620_p9, %p3435_p1  ;;  %p2754_p7 = scmp.lt.s32.totalorder %s2745_s7, %s2745_s7 }
  0x15   : > { %p2736_p12 = pneg %p3008_p11  ;;  %p2755_p10 = por %p2754_p7, %p2753_p5 }
  0x17   : > { %p2748_p0 = pnand %p2746_p13, %p2736_p12 }
  0x19   : > { %p2749_p3 = pneg %p2748_p0 }
  0x1b   : > { %p2756_p9 = pnand %p2755_p10, %p2749_p3 }
  0x1d   : > { %2759 = shalt.err (!%p2756_p9)
}
  0x1e   : > { %s2905_s8 = smov 256   ;;  %s2906_s9 = smov 16  }
  0x1f   : > { %2623 = dma.hbm_to_vmem [thread:$0]  (!%p3008_p11), %s3430_s1, 2048, %s177_s28, [#allocation7], %s2905_s8, %s2905_s8, %s2906_s9  }
  0x20   : > { %s2771_s12 = scalar_lea.vmem %s190_s6, 1024  ;;  %p2779_p2 = scmp.lt.s32.totalorder %s190_s6, %s190_s6 }
  0x21   : > { %p2772_p1 = scmp.ne.s32.totalorder %s190_s6, %s2771_s12  ;;  %p2780_p6 = scmp.lt.s32.totalorder %s2771_s12, %s2771_s12 }
  0x23   : > { %p2774_p13 = pnand %p2772_p1, %p2736_p12  ;;  %p2781_p5 = por %p2780_p6, %p2779_p2 }
  0x25   : > { %p2775_p0 = pneg %p2774_p13 }
  0x27   : > { %p2782_p10 = pnand %p2781_p5, %p2775_p0 }
  0x29   : > { %2785 = shalt.err (!%p2782_p10)
}
  0x2a   : > { %s3436_s13 = smov 128   ;;  %s2908_s14 = smov 8  }
  0x2b   : > { %2626 = dma.hbm_to_vmem [thread:$0]  (!%p3008_p11), %s3431_s2, 1024, %s190_s6, [#allocation7], %s3436_s13, %s3436_s13, %s2908_s14  }
  0x2c   : > { %s206_s27 = sshll.u32 %s3433_s4, 4  ;;  %s207_s27 = int_to_ptr.vmem [resolvable:$true] %s206_s27 }
  0x2d   : > { %s2786_s28 = scalar_lea.vmem %s207_s27, 16  ;;  %p2794_p3 = scmp.lt.s32.totalorder %s207_s27, %s207_s27 }
  0x2e   : > { %p2787_p1 = scmp.ne.s32.totalorder %s207_s27, %s2786_s28  ;;  %p2795_p7 = scmp.lt.s32.totalorder %s2786_s28, %s2786_s28 }
  0x30   : > { %p2789_p2 = pnand %p2787_p1, %p2736_p12  ;;  %p2796_p9 = por %p2795_p7, %p2794_p3 }
  0x32   : > { %p2790_p6 = pneg %p2789_p2 }
  0x34   : > { %p2797_p13 = pnand %p2796_p9, %p2790_p6 }
  0x36   : > { %2800 = shalt.err (!%p2797_p13)
}
  0x37   : > { %s2909_s30 = smov [#allocation9]   ;;  %s3042_s6 = sadd.s32 1, %s2901_s21  }
  0x38   : > { %2629 = dma.vmem_to_smem (!%p3008_p11), %s207_s27, 16, %s2909_s30, [#allocation5]  }
  0x39   : > { %s27_s7 = ssub.s32 %s2901_s21, %s3042_s6  ;;  %s30_s8 = sadd.s32 1, %s2897_s20 }
  0x3a   : > { %p28_p12 = scmp.eq.s32.totalorder %s27_s7, 0  ;;  %p37_p0 = scmp.ne.s32.totalorder %s2897_s20, %s2893_s19 }
  0x3b   : > { %p38_p5 = scmp.eq.s32.totalorder %s2901_s21, 0  ;;  %p2641_p10 = scmp.lt.s32.totalorder %s2901_s21, 2 }
  0x3c   : > { %s3052_s29 = scalar_select %p28_p12, %s2897_s20, %s30_s8  }
  0x3d   : > { %p39_p1 = por %p38_p5, %p37_p0  ;;  %p3444_p2 = scmp.eq.s32.totalorder %s2980_s22, 1 }
  0x3e   : > { %s217_s10 = sand.u32 1, %s2897_s20   ;;  %s2397_s11 = sshll.u32 %s2901_s21, 8 }
  0x3f   : > { %p3056_p6 = por %p3444_p2, %p37_p0  ;;  %s2315_s12 = sshll.u32 %s217_s10, 4 }
  0x40   : > { %s3065_s17 = scalar_lea.hbm %s3429_s0, %s2397_s11  ;;  %s221_s23 = scalar_lea.vmem [#allocation2], %s2315_s12 }
  0x41   : > { %s3445_s9 = scalar_select %p3056_p6, 1, 0 }
  0x42   : > { %s228_s27 = sshll.u32 %s221_s23, 4  ;;  %p3067_p11 = pnand %p2641_p10, %p39_p1  ;;  %s3071_s27 = int_to_ptr.vmem [resolvable:$true] %s228_s27 }
  0x43   : > { %s3073_s30 = scalar_lea.sflag [#allocation3], %s217_s10  ;;  %s2801_s7 = scalar_lea.hbm %s3065_s17, 256 }
  0x44   : > { %p2802_p3 = scmp.ne.s32.totalorder %s3065_s17, %s2801_s7  ;;  %p2803_p7 = pneg %p3067_p11 }
  0x45   : > { %s2806_s12 = scalar_lea.hbm %s3429_s0, 512  ;;  %p2807_p12 = scmp.lt.s32.totalorder %s3065_s17, %s3429_s0 }
  0x46   : > { %p2804_p9 = pnand %p2803_p7, %p2802_p3  ;;  %p2808_p0 = scmp.lt.s32.totalorder %s2806_s12, %s2801_s7 }
  0x48   : > { %p2805_p13 = pneg %p2804_p9  ;;  %p2809_p5 = por %p2808_p0, %p2807_p12 }
  0x4a   : > { %p2810_p10 = pnand %p2809_p5, %p2805_p13 }
  0x4c   : > { %2813 = shalt.err (!%p2810_p10)
}
  0x4d   : > { %s2814_s10 = scalar_lea.vmem %s3071_s27, 256  ;;  %s2910_s23 = smov [#allocation2]  }
  0x4e   : > { %p2815_p1 = scmp.ne.s32.totalorder %s3071_s27, %s2814_s10  ;;  %s2819_s13 = sshll.u32 %s2910_s23, 4  ;;  %s2820_s13 = int_to_ptr.vmem [resolvable:$false] %s2819_s13 }
  0x4f   : > { %s2821_s8 = scalar_lea.vmem %s2820_s13, 512  ;;  %p2822_p9 = scmp.lt.s32.totalorder %s3071_s27, %s2820_s13 }
  0x50   : > { %p2817_p2 = pnand %p2815_p1, %p2803_p7  ;;  %p2823_p6 = scmp.lt.s32.totalorder %s2821_s8, %s2814_s10 }
  0x52   : > { %p2818_p3 = pneg %p2817_p2  ;;  %p2824_p4 = por %p2823_p6, %p2822_p9 }
  0x54   : > { %p2825_p8 = pnand %p2824_p4, %p2818_p3 }
  0x56   : > { %2828 = shalt.err (!%p2825_p8)
}
  0x57   : > { %s3447_s7 = smov 128   ;;  %p3448_p7 = scmp.ne.s32.totalorder %s3442_s26, 0 }
  0x58   : > { %2633 = dma.hbm_to_vmem [thread:$0]  (!%p3067_p11), %s3065_s17, 256, %s3071_s27, %s3073_s30, %s3447_s7, %s3447_s7, %s2908_s14  }
  0x59   : > { %240 = sbr.rel (%p3448_p7) target bundleno = 3550 (0xdde), region = 40  ;;  %s3100_s11 = sand.u32 (!%p3448_p7), 1, %s2893_s19  }
  0x5a   : > { %s2319_s13 = sshll.u32 (!%p3448_p7), %s3100_s11, 4  ;;  %s243_s12 = scalar_lea.sflag (!%p3448_p7), [#allocation3], %s3100_s11 }
  0x5b   : > { %s3106_s28 = scalar_lea.vmem (!%p3448_p7), [#allocation2], %s2319_s13  ;;  %p3449_p4 = scmp.ne.s32.totalorder (!%p3448_p7), %s3440_s24, 0 }
  0x5e   : > { %2872 = dma.done.wait (%p3449_p4), %s243_s12, 256  }
  0x5f   : > { %2874 = vsyncadd (%p3449_p4), %s243_s12, 4294967040  ;;  %p3450_p8 = scmp.eq.s32.totalorder %s2980_s22, 0 }
  0x61   : > { %2876 = dma.done.wait (%p3450_p8), [#allocation7], 3072   ;;  %p3451_p6 = pmov %p3450_p8 }
  0x63   : > { %2878 = vsyncadd (%p3451_p6), [#allocation7], 4294964224  ;;  %p3452_p11 = pmov %p3451_p6 }
  0x64   : > { %p3453_p13 = pmov %p3451_p6 }
  0x65   : > { %2880 = dma.done.wait (%p3452_p11), [#allocation5], 16  }
  0x66   : > { %2882 = vsyncadd (%p3453_p13), [#allocation5], 4294967280 }
  0x67   : > { %263 = sfence }
  0x68   : > { %v305_v0 = vld [vmem:[#allocation6 + $0x78] sm:$0xff]  ;;  %v304_v1 = vld [vmem:[#allocation6 + $0x70] sm:$0xff]  ;;  %v303_v2 = vld [vmem:[#allocation6 + $0x68] sm:$0xff]  ;;  %v2911_v4 = vmov 0.0   ;;  %vm306_vm0 = vcmask 523264   ;;  %vm396_vm1 = vcmask 64512  }
  0x69   : > { %329 = vmatprep.subr.mxu0 %v305_v0  ;;  %v302_v3 = vld [vmem:[#allocation6 + $0x60] sm:$0xff]  ;;  %377 = vmatprep.mubr.f32.mxu0 %v2911_v4  ;;  %v301_v5 = vld [vmem:[#allocation6 + $0x58] sm:$0xff]  ;;  %v300_v6 = vld [vmem:[#allocation6 + $0x50] sm:$0xff]  ;;  %s2912_s24 = smov 64   ;;  %s2913_s26 = smov 56   ;;  %vm484_vm2 = vcmask 130048  }
  0x6a   : > { %330 = vmatpush1.msra.mxu0 %v304_v1  ;;  %v299_v7 = vld [vmem:[#allocation6 + $0x48] sm:$0xff]  ;;  %v298_v8 = vld [vmem:[#allocation6 + $0x40] sm:$0xff]  ;;  %v297_v9 = vld [vmem:[#allocation6 + $0x38] sm:$0xff]  ;;  %s2914_s14 = smov 120   ;;  %s2915_s17 = smov 48   ;;  %vm2078_vm3 = vcmask 195584  }
  0x6b   : > { %331 = vmatprep.subr.mxu0 %v303_v2  ;;  %v296_v10 = vld [vmem:[#allocation6 + $0x30] sm:$0xff]  ;;  %v295_v11 = vld [vmem:[#allocation6 + $0x28] sm:$0xff]  ;;  %v294_v12 = vld [vmem:[#allocation6 + $0x20] sm:$0xff]  ;;  %s2916_s27 = smov 112   ;;  %s497_s30 = sld [smem:[#allocation9]]  ;;  %vm2081_vm4 = vcmask 261120  }
  0x6c   : > { %332 = vmatpush1.msra.mxu0 %v302_v3  ;;  %v293_v13 = vld [vmem:[#allocation6 + $0x18] sm:$0xff]  ;;  %v292_v14 = vld [vmem:[#allocation6 + $0x10] sm:$0xff]  ;;  %v291_v15 = vld [vmem:[#allocation6 + $0x8] sm:$0xff]  ;;  %s2330_s15 = sld [smem:[#allocation9 + $0x8]]  ;;  %s2917_s16 = smov 40   ;;  %vm2084_vm5 = vcmask 326656  }
  0x6d   : > { %333 = vmatprep.subr.mxu0 %v301_v5  ;;  %v290_v16 = vld [vmem:[#allocation6] sm:$0xff]  ;;  %v289_v18 = vld [vmem:[%s3106_s28 + $0x8] sm:$0xff]  ;;  %s2918_s10 = smov 104   ;;  %s2337_s23 = sld [smem:[#allocation9 + $0x1]]  ;;  %vm2087_vm6 = vcmask 392192   ;;  %vm2090_vm7 = vcmask 457728  }
  0x6e   : > { %334 = vmatpush1.msra.mxu0 %v300_v6  ;;  %v288_v17 = vld [vmem:[%s3106_s28] sm:$0xff]  ;;  %s2338_s8 = sld [smem:[#allocation9 + $0x9]]  ;;  %s2919_s28 = smov 32  }
  0x6f   : > { %335 = vmatprep.subr.mxu0 %v299_v7  ;;  %s2345_s7 = sld [smem:[#allocation9 + $0x2]]  ;;  %p3454_p0 = scmp.ne.s32.totalorder %s3445_s9, 0 }
  0x70   : > { %336 = vmatpush1.msra.mxu0 %v298_v8  ;;  %s2346_s12 = sld [smem:[#allocation9 + $0xa]] }
  0x71   : > { %337 = vmatprep.subr.mxu0 %v297_v9  ;;  %v499_v39 = vstv %s497_s30  ;;  %s2921_s30 = smov 24  }
  0x72   : > { %338 = vmatpush1.msra.mxu0 %v296_v10  ;;  %v502_v42 = vstv %s2330_s15  ;;  %s2922_s15 = smov 88  }
  0x73   : > { %339 = vmatprep.subr.mxu0 %v295_v11 }
  0x74   : > { %340 = vmatpush1.msra.mxu0 %v294_v12 }
  0x75   : > { %341 = vmatprep.subr.mxu0 %v293_v13 }
  0x76   : > { %342 = vmatpush1.msra.mxu0 %v292_v14 }
  0x77   : > { %343 = vmatprep.subr.mxu0 %v291_v15 }
  0x78   : > { %344 = vmatpush1.msra.mxu0 %v290_v16 }
  0x79   : > { %2324 = vmatmul.mubr.msk.f32.vlgmr.msra.gmra.mxu0 %vm306_vm0, %v288_v17 }
  0x7a   : > { %383 = vmatprep.mubr.f32.mxu0 %v2911_v4 }
  0x7d   : > { %2325 = vmatmul.mubr.msk.f32.gmra.mxu0 %vm306_vm0, %v289_v18 }
 0x139   : > { %v3124_v19 = vpop.f32.mrf.mxu0 }
 0x13a   : > { %2477 = vmatprep.mubr.msk.f32.mxu0 %vm396_vm1, %v3124_v19 }
 0x13b   : > { %v3128_v20 = vpop.f32.mrf.mxu0 }
 0x13d   : > { %v3130_v21 = vpop.f32.mrf.mxu0 }
 0x13e   : > { %394 = vrot.lane.b32.xlu0 %v3130_v21, %s2912_s24 }
 0x13f   : > { %v3133_v22 = vpop.f32.mrf.mxu0 }
 0x140   : > { %2480 = vmatprep.subr.mxu1 %v3133_v22 }
 0x141   : > { %2481 = vmatpush3.msra.mxu1 %v3133_v22 }
 0x142   : > { %392 = vrot.lane.b32.xlu0 %v3124_v19, %s2912_s24  ;;  %2482 = vmatprep.subr.mxu1 %v3128_v20  ;;  %s2920_s24 = smov 96  }
 0x143   : > { %2483 = vmatpush3.msra.mxu1 %v3128_v20 }
 0x146   : > { %594 = vrot.lane.b32.xlu0 %v3130_v21, %s2913_s26 }
 0x14a   : > { %588 = vrot.lane.b32.xlu0 %v3124_v19, %s2914_s14 }
 0x14e   : > { %800 = vrot.lane.b32.xlu0 %v3130_v21, %s2915_s17 }
 0x152   : > { %590 = vrot.lane.b32.xlu0 %v3130_v21, %s2914_s14 }
 0x156   : > { %798 = vrot.lane.b32.xlu0 %v3124_v19, %s2915_s17 }
 0x15a   : > { %796 = vrot.lane.b32.xlu0 %v3130_v21, %s2916_s27 }
 0x1b0   : > { %v395_v23 = vpop.permute.xlu0 %394 }
 0x1b1   : > { %2473 = vmatprep.subr.msk.mxu0 %vm396_vm1, %v395_v23 }
 0x1b2   : > { %2474 = vmatpush3.xpose.msk.msra.mxu0 %vm396_vm1, %v395_v23 }
 0x1b4   : > { %v393_v24 = vpop.permute.xlu0 %392 }
 0x1b5   : > { %2475 = vmatprep.subr.msk.mxu0 %vm396_vm1, %v393_v24 }
 0x1b6   : > { %2476 = vmatpush3.xpose.msk.msra.mxu0 %vm396_vm1, %v393_v24 }
 0x1b8   : > { %v595_v25 = vpop.permute.xlu0 %594 }
 0x1b9   : > { %2478 = vmatmul.mubr.msk.f32.vlgmr.msra.gmra.mxu0 %vm396_vm1, %v3130_v21  ;;  %2487 = vmatprep.subr.msk.mxu1 %vm396_vm1, %v595_v25 }
 0x1bc   : > { %v589_v41 = vpop.permute.xlu0 %588 }
 0x1c0   : > { %v801_v50 = vpop.permute.xlu0 %800 }
 0x1c4   : > { %v591_v53 = vpop.permute.xlu0 %590 }
 0x1c8   : > { %v799_v55 = vpop.permute.xlu0 %798 }
 0x1cc   : > { %v797_v56 = vpop.permute.xlu0 %796 }
 0x279   : > { %v2479_v26 = vpop.f32.mrf.mxu0 }
 0x27a   : > { %v481_v28 = vmul.f32 0.35355338, %v2479_v26 }
 0x27b   : > { %v471_v27 = vpop.f32.mrf.mxu0 }
 0x27c   : > { %v480_v29 = vmul.f32 0.35355338, %v471_v27  ;;  %v483_v32 = vmax.f32 %v481_v28, 0.0  ;;  %v504_v48 = vmul.f32 %v502_v42, %v481_v28  ;;  %v697_v27 = vstv %s2337_s23  ;;  %s2362_s23 = sld [smem:[#allocation9 + $0xc]] }
 0x27e   : > { %v482_v30 = vmax.f32 %v480_v29, 0.0  ;;  %v488_v33 = vsel %vm484_vm2, %v483_v32, 0.0  ;;  %v503_v43 = vmul.f32 %v502_v42, %v480_v29  ;;  %v906_v42 = vstv %s2346_s12  ;;  %s2369_s12 = sld [smem:[#allocation9 + $0x5]] }
 0x280   : > { %v485_v31 = vsel %vm484_vm2, %v482_v30, 0.0 }
 0x281   : > { %486 = vadd.xlane.f32.xlu1 %v485_v31 }
 0x285   : > { %489 = vadd.xlane.f32.xlu1 %v488_v33 }
 0x296   : > { %592 = vrot.lane.b32.xlu1 %v3124_v19, %s2913_s26 }
 0x29a   : > { %794 = vrot.lane.b32.xlu1 %v3124_v19, %s2916_s27 }
 0x30a   : > { %v487_v34 = vpop.xlane.xlu1 %486 }
 0x30b   : > { %v491_v35 = vadd.f32 1e-08, %v487_v34 }
 0x30d   : > { %2702 = vrcp.f32 %v491_v35 }
 0x30e   : > { %v490_v36 = vpop.xlane.xlu1 %489 }
 0x30f   : > { %v492_v37 = vadd.f32 1e-08, %v490_v36 }
 0x311   : > { %2704 = vrcp.f32 %v492_v37 }
 0x312   : > { %v593_v52 = vpop.permute.xlu1 %592 }
 0x316   : > { %v795_v54 = vpop.permute.xlu1 %794 }
 0x31a   : > { %v2703_v38 = vpop.eup %2702 }
 0x31b   : > { %v494_v40 = vmul.f32 %v2703_v38, %v482_v30  ;;  %v700_v30 = vstv %s2338_s8  ;;  %s2923_s8 = smov 16  }
 0x31d   : > { %v500_v44 = vmul.f32 %v499_v39, %v494_v40  ;;  %v903_v40 = vstv %s2345_s7  ;;  %s2924_s7 = smov 80  }
 0x31e   : > { %v2705_v45 = vpop.eup %2704 }
 0x31f   : > { %v496_v46 = vmul.f32 %v2705_v45, %v483_v32  ;;  %v505_v47 = vadd.f32 %v503_v43, %v500_v44 }
 0x321   : > { %v501_v49 = vmul.f32 %v499_v39, %v496_v46  ;;  %2484 = vmatprep.mubr.msk.f32.mxu1 %vm484_vm2, %v505_v47 }
 0x323   : > { %v506_v51 = vadd.f32 %v504_v48, %v501_v49 }
 0x325   : > { %2485 = vmatmul.mubr.msk.f32.vlgmr.msra.gmra.mxu1 %vm484_vm2, %v506_v51 }
 0x326   : > { %2488 = vmatpush3.xpose.msk.msra.mxu1 %vm396_vm1, %v595_v25  ;;  %2491 = vmatprep.mubr.msk.f32.mxu1 %vm396_vm1, %v589_v41 }
 0x327   : > { %2489 = vmatprep.subr.msk.mxu1 %vm396_vm1, %v593_v52 }
 0x32a   : > { %2490 = vmatpush3.xpose.msk.msra.mxu1 %vm396_vm1, %v593_v52 }
 0x32b   : > { %2501 = vmatprep.subr.msk.mxu1 %vm396_vm1, %v801_v50 }
 0x32d   : > { %2492 = vmatmul.mubr.msk.f32.vlgmr.msra.gmra.mxu1 %vm396_vm1, %v591_v53 }
 0x32e   : > { %2502 = vmatpush3.xpose.msk.msra.mxu1 %vm396_vm1, %v801_v50  ;;  %2505 = vmatprep.mubr.msk.f32.mxu1 %vm396_vm1, %v795_v54 }
 0x32f   : > { %2503 = vmatprep.subr.msk.mxu1 %vm396_vm1, %v799_v55 }
 0x332   : > { %2504 = vmatpush3.xpose.msk.msra.mxu1 %vm396_vm1, %v799_v55 }
 0x335   : > { %2506 = vmatmul.mubr.msk.f32.vlgmr.msra.gmra.mxu1 %vm396_vm1, %v797_v56 }
 0x3e5   : > { %v3178_v57 = vpop.f32.mrf.mxu1 }
 0x3e7   : > { %v3180_v58 = vpop.f32.mrf.mxu1 }
 0x3ed   : > { %v2493_v59 = vpop.f32.mrf.mxu1 }
 0x3ee   : > { %v3182_v60 = vmul.f32 0.35355338, %v2493_v59 }
 0x3ef   : > { %v670_v61 = vpop.f32.mrf.mxu1 }
 0x3f0   : > { %v679_v62 = vmul.f32 0.35355338, %v670_v61  ;;  %v682_v63 = vmax.f32 %v3182_v60, 0.0  ;;  %v702_v35 = vmul.f32 %v700_v30, %v3182_v60 }
 0x3f2   : > { %v686_v0 = vsel %vm484_vm2, %v682_v63, 0.0  ;;  %v681_v1 = vmax.f32 %v679_v62, 0.0  ;;  %v701_v33 = vmul.f32 %v700_v30, %v679_v62 }
 0x3f3   : > { %687 = vadd.xlane.f32.xlu0 %v686_v0 }
 0x3f4   : > { %v683_v2 = vsel %vm484_vm2, %v681_v1, 0.0 }
 0x3f5   : > { %684 = vadd.xlane.f32.xlu1 %v683_v2  ;;  %v2507_v3 = vpop.f32.mrf.mxu1 }
 0x3f6   : > { %v3187_v4 = vmul.f32 0.35355338, %v2507_v3 }
 0x3f7   : > { %v876_v5 = vpop.f32.mrf.mxu1 }
 0x3f8   : > { %v3189_v6 = vmul.f32 0.35355338, %v876_v5  ;;  %v888_v7 = vmax.f32 %v3187_v4, 0.0  ;;  %v908_v49 = vmul.f32 %v906_v42, %v3187_v4 }
 0x3fa   : > { %v892_v8 = vsel %vm484_vm2, %v888_v7, 0.0  ;;  %v887_v9 = vmax.f32 %v3189_v6, 0.0  ;;  %v907_v47 = vmul.f32 %v906_v42, %v3189_v6 }
 0x3fb   : > { %893 = vadd.xlane.f32.xlu1 %v892_v8 }
 0x3fc   : > { %v889_v10 = vsel %vm484_vm2, %v887_v9, 0.0 }
 0x3fd   : > { %890 = vadd.xlane.f32.xlu0 %v889_v10 }
 0x40c   : > { %707 = vrot.lane.b32.xlu1 %v3128_v20, %s2914_s14 }
 0x410   : > { %913 = vrot.lane.b32.xlu1 %v3133_v22, %s2916_s27 }
 0x413   : > { %709 = vrot.lane.b32.xlu0 %v3133_v22, %s2914_s14  ;;  %s2353_s14 = sld [smem:[#allocation9 + $0x3]] }
 0x414   : > { %1004 = vrot.lane.b32.xlu1 %v3130_v21, %s2917_s16 }
 0x417   : > { %911 = vrot.lane.b32.xlu0 %v3128_v20, %s2916_s27  ;;  %s2354_s27 = sld [smem:[#allocation9 + $0xb]] }
 0x418   : > { %998 = vrot.lane.b32.xlu1 %v3124_v19, %s2918_s10 }
 0x41b   : > { %1002 = vrot.lane.b32.xlu0 %v3124_v19, %s2917_s16 }
 0x41c   : > { %1115 = vrot.lane.b32.xlu1 %v3128_v20, %s2918_s10 }
 0x41f   : > { %1000 = vrot.lane.b32.xlu0 %v3130_v21, %s2918_s10 }
 0x47c   : > { %v688_v11 = vpop.xlane.xlu0 %687 }
 0x47d   : > { %v690_v12 = vadd.f32 1e-08, %v688_v11 }
 0x47e   : > { %v685_v13 = vpop.xlane.xlu1 %684 }
 0x47f   : > { %2706 = vrcp.f32 %v690_v12  ;;  %v689_v14 = vadd.f32 1e-08, %v685_v13 }
 0x481   : > { %2708 = vrcp.f32 %v689_v14  ;;  %v1107_v14 = vstv %s2353_s14  ;;  %s2925_s14 = smov 8  }
 0x484   : > { %v894_v15 = vpop.xlane.xlu1 %893 }
 0x485   : > { %v896_v16 = vadd.f32 1e-08, %v894_v15 }
 0x486   : > { %v891_v17 = vpop.xlane.xlu0 %890 }
 0x487   : > { %2710 = vrcp.f32 %v896_v16  ;;  %v895_v18 = vadd.f32 1e-08, %v891_v17  ;;  %v1110_v16 = vstv %s2354_s27  ;;  %s2926_s27 = smov 72  }
 0x488   : > { %v708_v23 = vpop.permute.xlu1 %707 }
 0x489   : > { %2712 = vrcp.f32 %v895_v18 }
 0x48a   : > { %v710_v24 = vpop.permute.xlu0 %709 }
 0x48b   : > { %2494 = vmatprep.subr.mxu0 %v710_v24 }
 0x48c   : > { %v2707_v25 = vpop.eup %2706  ;;  %2495 = vmatpush3.msra.mxu0 %v710_v24  ;;  %v914_v29 = vpop.permute.xlu1 %913 }
 0x48d   : > { %2496 = vmatprep.subr.mxu0 %v708_v23  ;;  %v694_v26 = vmul.f32 %v2707_v25, %v682_v63 }
 0x48e   : > { %v2709_v28 = vpop.eup %2708  ;;  %2497 = vmatpush3.msra.mxu0 %v708_v23  ;;  %v912_v43 = vpop.permute.xlu0 %911 }
 0x48f   : > { %2508 = vmatprep.subr.mxu0 %v914_v29  ;;  %v692_v31 = vmul.f32 %v2709_v28, %v681_v1  ;;  %v699_v32 = vmul.f32 %v697_v27, %v694_v26 }
 0x490   : > { %v1005_v45 = vpop.permute.xlu1 %1004 }
 0x491   : > { %v698_v34 = vmul.f32 %v697_v27, %v692_v31  ;;  %v704_v38 = vadd.f32 %v702_v35, %v699_v32 }
 0x492   : > { %v1003_v53 = vpop.permute.xlu0 %1002 }
 0x493   : > { %v703_v36 = vadd.f32 %v701_v33, %v698_v34 }
 0x494   : > { %v2711_v37 = vpop.eup %2710  ;;  %v999_v52 = vpop.permute.xlu1 %998 }
 0x495   : > { %2498 = vmatprep.mubr.msk.f32.mxu0 %vm484_vm2, %v703_v36  ;;  %v900_v39 = vmul.f32 %v2711_v37, %v888_v7 }
 0x496   : > { %v2713_v41 = vpop.eup %2712  ;;  %2499 = vmatmul.mubr.msk.f32.vlgmr.msra.gmra.mxu0 %vm484_vm2, %v704_v38  ;;  %v1001_v54 = vpop.permute.xlu0 %1000 }
 0x497   : > { %2509 = vmatpush3.msra.mxu0 %v914_v29  ;;  %v898_v44 = vmul.f32 %v2713_v41, %v887_v9  ;;  %v905_v46 = vmul.f32 %v903_v40, %v900_v39 }
 0x498   : > { %2510 = vmatprep.subr.mxu0 %v912_v43  ;;  %v1116_v5 = vpop.permute.xlu1 %1115 }
 0x499   : > { %2511 = vmatpush3.msra.mxu0 %v912_v43  ;;  %v904_v48 = vmul.f32 %v903_v40, %v898_v44  ;;  %v910_v51 = vadd.f32 %v908_v49, %v905_v46 }
 0x49a   : > { %2515 = vmatprep.subr.msk.mxu0 %vm396_vm1, %v1005_v45 }
 0x49b   : > { %v909_v50 = vadd.f32 %v907_v47, %v904_v48 }
 0x49d   : > { %2512 = vmatprep.mubr.msk.f32.mxu0 %vm484_vm2, %v909_v50 }
 0x49e   : > { %2513 = vmatmul.mubr.msk.f32.vlgmr.msra.gmra.mxu0 %vm484_vm2, %v910_v51 }
 0x49f   : > { %2516 = vmatpush3.xpose.msk.msra.mxu0 %vm396_vm1, %v1005_v45  ;;  %2519 = vmatprep.mubr.msk.f32.mxu0 %vm396_vm1, %v999_v52  ;;  %v1314_v52 = vstv %s2362_s23 }
 0x4a0   : > { %2517 = vmatprep.subr.msk.mxu0 %vm396_vm1, %v1003_v53 }
 0x4a3   : > { %2518 = vmatpush3.xpose.msk.msra.mxu0 %vm396_vm1, %v1003_v53 }
 0x4a6   : > { %2520 = vmatmul.mubr.msk.f32.vlgmr.msra.gmra.mxu0 %vm396_vm1, %v1001_v54 }
 0x556   : > { %v3226_v55 = vpop.f32.mrf.mxu0 }
 0x558   : > { %v3228_v56 = vpop.f32.mrf.mxu0 }
 0x55e   : > { %v3230_v59 = vpop.f32.mrf.mxu0 }
 0x560   : > { %v3232_v60 = vpop.f32.mrf.mxu0 }
 0x566   : > { %v2521_v61 = vpop.f32.mrf.mxu0 }
 0x567   : > { %v1090_v62 = vmul.f32 0.35355338, %v2521_v61 }
 0x568   : > { %v1080_v63 = vpop.f32.mrf.mxu0 }
 0x569   : > { %v1089_v0 = vmul.f32 0.35355338, %v1080_v63  ;;  %v1092_v1 = vmax.f32 %v1090_v62, 0.0  ;;  %v1112_v25 = vmul.f32 %v1110_v16, %v1090_v62 }
 0x56b   : > { %v1096_v2 = vsel %vm484_vm2, %v1092_v1, 0.0  ;;  %v1091_v3 = vmax.f32 %v1089_v0, 0.0  ;;  %v1111_v23 = vmul.f32 %v1110_v16, %v1089_v0 }
 0x56c   : > { %1097 = vadd.xlane.f32.xlu0 %v1096_v2 }
 0x56d   : > { %v1093_v4 = vsel %vm484_vm2, %v1091_v3, 0.0 }
 0x56e   : > { %1094 = vadd.xlane.f32.xlu1 %v1093_v4 }
 0x57f   : > { %1208 = vrot.lane.b32.xlu1 %v3130_v21, %s2919_s28 }
 0x582   : > { %1117 = vrot.lane.b32.xlu0 %v3133_v22, %s2918_s10  ;;  %s2361_s10 = sld [smem:[#allocation9 + $0x4]] }
 0x583   : > { %1202 = vrot.lane.b32.xlu1 %v3124_v19, %s2920_s24 }
 0x586   : > { %1206 = vrot.lane.b32.xlu0 %v3124_v19, %s2919_s28 }
 0x587   : > { %1319 = vrot.lane.b32.xlu1 %v3128_v20, %s2920_s24 }
 0x588   : > { %v1311_v50 = vstv %s2361_s10  ;;  %s2378_s10 = sld [smem:[#allocation9 + $0xe]] }
 0x58a   : > { %1204 = vrot.lane.b32.xlu0 %v3130_v21, %s2920_s24 }
 0x5f5   : > { %v1098_v6 = vpop.xlane.xlu0 %1097 }
 0x5f6   : > { %v1100_v7 = vadd.f32 1e-08, %v1098_v6 }
 0x5f7   : > { %v1095_v8 = vpop.xlane.xlu1 %1094 }
 0x5f8   : > { %2714 = vrcp.f32 %v1100_v7  ;;  %v1099_v9 = vadd.f32 1e-08, %v1095_v8 }
 0x5f9   : > { %v1118_v10 = vpop.permute.xlu0 %1117 }
 0x5fa   : > { %2716 = vrcp.f32 %v1099_v9  ;;  %2522 = vmatprep.subr.mxu1 %v1118_v10 }
 0x5fb   : > { %2523 = vmatpush3.msra.mxu1 %v1118_v10  ;;  %v1209_v11 = vpop.permute.xlu1 %1208 }
 0x5fc   : > { %2524 = vmatprep.subr.mxu1 %v1116_v5 }
 0x5fd   : > { %2525 = vmatpush3.msra.mxu1 %v1116_v5  ;;  %v1207_v29 = vpop.permute.xlu0 %1206 }
 0x5fe   : > { %2529 = vmatprep.subr.msk.mxu1 %vm396_vm1, %v1209_v11 }
 0x5ff   : > { %v1203_v28 = vpop.permute.xlu1 %1202 }
 0x601   : > { %v1205_v30 = vpop.permute.xlu0 %1204 }
 0x603   : > { %v1320_v41 = vpop.permute.xlu1 %1319 }
 0x605   : > { %v2715_v12 = vpop.eup %2714 }
 0x606   : > { %v1104_v13 = vmul.f32 %v2715_v12, %v1092_v1 }
 0x607   : > { %v2717_v15 = vpop.eup %2716 }
 0x608   : > { %v1102_v17 = vmul.f32 %v2717_v15, %v1091_v3  ;;  %v1109_v18 = vmul.f32 %v1107_v14, %v1104_v13 }
 0x60a   : > { %v1108_v24 = vmul.f32 %v1107_v14, %v1102_v17  ;;  %v1114_v27 = vadd.f32 %v1112_v25, %v1109_v18 }
 0x60c   : > { %v1113_v26 = vadd.f32 %v1111_v23, %v1108_v24 }
 0x60e   : > { %2526 = vmatprep.mubr.msk.f32.mxu1 %vm484_vm2, %v1113_v26 }
 0x60f   : > { %2527 = vmatmul.mubr.msk.f32.vlgmr.msra.gmra.mxu1 %vm484_vm2, %v1114_v27 }
 0x610   : > { %2530 = vmatpush3.xpose.msk.msra.mxu1 %vm396_vm1, %v1209_v11  ;;  %2533 = vmatprep.mubr.msk.f32.mxu1 %vm396_vm1, %v1203_v28  ;;  %v1515_v28 = vstv %s2369_s12 }
 0x611   : > { %2531 = vmatprep.subr.msk.mxu1 %vm396_vm1, %v1207_v29 }
 0x614   : > { %2532 = vmatpush3.xpose.msk.msra.mxu1 %vm396_vm1, %v1207_v29 }
 0x617   : > { %2534 = vmatmul.mubr.msk.f32.vlgmr.msra.gmra.mxu1 %vm396_vm1, %v1205_v30 }
 0x6cf   : > { %v3256_v31 = vpop.f32.mrf.mxu1 }
 0x6d1   : > { %v3258_v32 = vpop.f32.mrf.mxu1 }
 0x6d7   : > { %v2535_v33 = vpop.f32.mrf.mxu1 }
 0x6d8   : > { %v1294_v34 = vmul.f32 0.35355338, %v2535_v33 }
 0x6d9   : > { %v1284_v35 = vpop.f32.mrf.mxu1 }
 0x6da   : > { %v1293_v36 = vmul.f32 0.35355338, %v1284_v35  ;;  %v1296_v37 = vmax.f32 %v1294_v34, 0.0  ;;  %v1316_v63 = vmul.f32 %v1314_v52, %v1294_v34 }
 0x6dc   : > { %v1300_v38 = vsel %vm484_vm2, %v1296_v37, 0.0  ;;  %v1295_v39 = vmax.f32 %v1293_v36, 0.0  ;;  %v1315_v61 = vmul.f32 %v1314_v52, %v1293_v36 }
 0x6dd   : > { %1301 = vadd.xlane.f32.xlu0 %v1300_v38 }
 0x6de   : > { %v1297_v40 = vsel %vm484_vm2, %v1295_v39, 0.0 }
 0x6df   : > { %1298 = vadd.xlane.f32.xlu1 %v1297_v40 }
 0x6f0   : > { %1412 = vrot.lane.b32.xlu1 %v3130_v21, %s2921_s30 }
 0x6f3   : > { %1321 = vrot.lane.b32.xlu0 %v3133_v22, %s2920_s24  ;;  %s2370_s24 = sld [smem:[#allocation9 + $0xd]] }
 0x6f4   : > { %1406 = vrot.lane.b32.xlu1 %v3124_v19, %s2922_s15 }
 0x6f7   : > { %1410 = vrot.lane.b32.xlu0 %v3124_v19, %s2921_s30 }
 0x6f8   : > { %1523 = vrot.lane.b32.xlu1 %v3128_v20, %s2922_s15 }
 0x6f9   : > { %v1518_v30 = vstv %s2370_s24 }
 0x6fb   : > { %1408 = vrot.lane.b32.xlu0 %v3130_v21, %s2922_s15 }
 0x766   : > { %v1302_v42 = vpop.xlane.xlu0 %1301 }
 0x767   : > { %v1304_v43 = vadd.f32 1e-08, %v1302_v42 }
 0x768   : > { %v1299_v44 = vpop.xlane.xlu1 %1298 }
 0x769   : > { %2718 = vrcp.f32 %v1304_v43  ;;  %v1303_v45 = vadd.f32 1e-08, %v1299_v44 }
 0x76a   : > { %v1322_v46 = vpop.permute.xlu0 %1321 }
 0x76b   : > { %2720 = vrcp.f32 %v1303_v45  ;;  %2536 = vmatprep.subr.mxu0 %v1322_v46 }
 0x76c   : > { %2537 = vmatpush3.msra.mxu0 %v1322_v46  ;;  %v1413_v47 = vpop.permute.xlu1 %1412 }
 0x76d   : > { %2538 = vmatprep.subr.mxu0 %v1320_v41 }
 0x76e   : > { %2539 = vmatpush3.msra.mxu0 %v1320_v41  ;;  %v1411_v3 = vpop.permute.xlu0 %1410 }
 0x76f   : > { %2543 = vmatprep.subr.msk.mxu0 %vm396_vm1, %v1413_v47 }
 0x770   : > { %v1407_v2 = vpop.permute.xlu1 %1406 }
 0x772   : > { %v1409_v4 = vpop.permute.xlu0 %1408 }
 0x774   : > { %v1524_v15 = vpop.permute.xlu1 %1523 }
 0x776   : > { %v2719_v48 = vpop.eup %2718 }
 0x777   : > { %v1308_v49 = vmul.f32 %v2719_v48, %v1296_v37 }
 0x778   : > { %v2721_v51 = vpop.eup %2720 }
 0x779   : > { %v1306_v53 = vmul.f32 %v2721_v51, %v1295_v39  ;;  %v1313_v54 = vmul.f32 %v1311_v50, %v1308_v49 }
 0x77b   : > { %v1312_v62 = vmul.f32 %v1311_v50, %v1306_v53  ;;  %v1318_v1 = vadd.f32 %v1316_v63, %v1313_v54 }
 0x77d   : > { %v1317_v0 = vadd.f32 %v1315_v61, %v1312_v62 }
 0x77f   : > { %2540 = vmatprep.mubr.msk.f32.mxu0 %vm484_vm2, %v1317_v0 }
 0x780   : > { %2541 = vmatmul.mubr.msk.f32.vlgmr.msra.gmra.mxu0 %vm484_vm2, %v1318_v1 }
 0x781   : > { %2544 = vmatpush3.xpose.msk.msra.mxu0 %vm396_vm1, %v1413_v47  ;;  %2547 = vmatprep.mubr.msk.f32.mxu0 %vm396_vm1, %v1407_v2 }
 0x782   : > { %2545 = vmatprep.subr.msk.mxu0 %vm396_vm1, %v1411_v3 }
 0x785   : > { %2546 = vmatpush3.xpose.msk.msra.mxu0 %vm396_vm1, %v1411_v3 }
 0x788   : > { %2548 = vmatmul.mubr.msk.f32.vlgmr.msra.gmra.mxu0 %vm396_vm1, %v1409_v4  ;;  %v1722_v4 = vstv %s2378_s10 }
 0x840   : > { %v3282_v5 = vpop.f32.mrf.mxu0 }
 0x842   : > { %v3284_v6 = vpop.f32.mrf.mxu0 }
 0x848   : > { %v2549_v7 = vpop.f32.mrf.mxu0 }
 0x849   : > { %v1498_v8 = vmul.f32 0.35355338, %v2549_v7 }
 0x84a   : > { %v1488_v9 = vpop.f32.mrf.mxu0 }
 0x84b   : > { %v1497_v10 = vmul.f32 0.35355338, %v1488_v9  ;;  %v1500_v11 = vmax.f32 %v1498_v8, 0.0  ;;  %v1520_v37 = vmul.f32 %v1518_v30, %v1498_v8 }
 0x84d   : > { %v1504_v12 = vsel %vm484_vm2, %v1500_v11, 0.0  ;;  %v1499_v13 = vmax.f32 %v1497_v10, 0.0  ;;  %v1519_v35 = vmul.f32 %v1518_v30, %v1497_v10 }
 0x84e   : > { %1505 = vadd.xlane.f32.xlu0 %v1504_v12 }
 0x84f   : > { %v1501_v14 = vsel %vm484_vm2, %v1499_v13, 0.0 }
 0x850   : > { %1502 = vadd.xlane.f32.xlu1 %v1501_v14 }
 0x861   : > { %1616 = vrot.lane.b32.xlu1 %v3130_v21, %s2923_s8 }
 0x864   : > { %1525 = vrot.lane.b32.xlu0 %v3133_v22, %s2922_s15  ;;  %s2377_s15 = sld [smem:[#allocation9 + $0x6]] }
 0x865   : > { %1610 = vrot.lane.b32.xlu1 %v3124_v19, %s2924_s7 }
 0x868   : > { %1614 = vrot.lane.b32.xlu0 %v3124_v19, %s2923_s8 }
 0x869   : > { %1727 = vrot.lane.b32.xlu1 %v3128_v20, %s2924_s7 }
 0x86c   : > { %1612 = vrot.lane.b32.xlu0 %v3130_v21, %s2924_s7 }
 0x8d7   : > { %v1506_v16 = vpop.xlane.xlu0 %1505 }
 0x8d8   : > { %v1508_v17 = vadd.f32 1e-08, %v1506_v16 }
 0x8d9   : > { %v1503_v18 = vpop.xlane.xlu1 %1502 }
 0x8da   : > { %2722 = vrcp.f32 %v1508_v17  ;;  %v1507_v23 = vadd.f32 1e-08, %v1503_v18 }
 0x8db   : > { %v1526_v24 = vpop.permute.xlu0 %1525 }
 0x8dc   : > { %2724 = vrcp.f32 %v1507_v23  ;;  %2550 = vmatprep.subr.mxu1 %v1526_v24 }
 0x8dd   : > { %2551 = vmatpush3.msra.mxu1 %v1526_v24  ;;  %v1617_v25 = vpop.permute.xlu1 %1616 }
 0x8de   : > { %2552 = vmatprep.subr.mxu1 %v1524_v15 }
 0x8df   : > { %2553 = vmatpush3.msra.mxu1 %v1524_v15  ;;  %v1615_v41 = vpop.permute.xlu0 %1614 }
 0x8e0   : > { %2557 = vmatprep.subr.msk.mxu1 %vm396_vm1, %v1617_v25 }
 0x8e1   : > { %v1611_v40 = vpop.permute.xlu1 %1610 }
 0x8e3   : > { %v1613_v42 = vpop.permute.xlu0 %1612 }
 0x8e5   : > { %v1728_v53 = vpop.permute.xlu1 %1727 }
 0x8e7   : > { %v2723_v26 = vpop.eup %2722 }
 0x8e8   : > { %v1512_v27 = vmul.f32 %v2723_v26, %v1500_v11 }
 0x8e9   : > { %v2725_v29 = vpop.eup %2724 }
 0x8ea   : > { %v1510_v33 = vmul.f32 %v2725_v29, %v1499_v13  ;;  %v1517_v34 = vmul.f32 %v1515_v28, %v1512_v27 }
 0x8ec   : > { %v1516_v36 = vmul.f32 %v1515_v28, %v1510_v33  ;;  %v1522_v39 = vadd.f32 %v1520_v37, %v1517_v34 }
 0x8ee   : > { %v1521_v38 = vadd.f32 %v1519_v35, %v1516_v36 }
 0x8f0   : > { %2554 = vmatprep.mubr.msk.f32.mxu1 %vm484_vm2, %v1521_v38 }
 0x8f1   : > { %2555 = vmatmul.mubr.msk.f32.vlgmr.msra.gmra.mxu1 %vm484_vm2, %v1522_v39 }
 0x8f2   : > { %2558 = vmatpush3.xpose.msk.msra.mxu1 %vm396_vm1, %v1617_v25  ;;  %2561 = vmatprep.mubr.msk.f32.mxu1 %vm396_vm1, %v1611_v40 }
 0x8f3   : > { %2559 = vmatprep.subr.msk.mxu1 %vm396_vm1, %v1615_v41 }
 0x8f6   : > { %2560 = vmatpush3.xpose.msk.msra.mxu1 %vm396_vm1, %v1615_v41  ;;  %v2100_v41 = vld [vmem:[#allocation8 + $0x38] sm:$0xff] }
 0x8f9   : > { %2562 = vmatmul.mubr.msk.f32.vlgmr.msra.gmra.mxu1 %vm396_vm1, %v1613_v42  ;;  %v2099_v42 = vld [vmem:[#allocation8 + $0x30] sm:$0xff] }
 0x9b1   : > { %v3308_v43 = vpop.f32.mrf.mxu1 }
 0x9b3   : > { %v3310_v44 = vpop.f32.mrf.mxu1 }
 0x9b9   : > { %v2563_v45 = vpop.f32.mrf.mxu1 }
 0x9ba   : > { %v1702_v46 = vmul.f32 0.35355338, %v2563_v45  ;;  %v2096_v45 = vld [vmem:[#allocation8 + $0x18] sm:$0xff] }
 0x9bb   : > { %v1692_v47 = vpop.f32.mrf.mxu1 }
 0x9bc   : > { %v1701_v48 = vmul.f32 0.35355338, %v1692_v47  ;;  %v1704_v49 = vmax.f32 %v1702_v46, 0.0  ;;  %v1724_v11 = vmul.f32 %v1722_v4, %v1702_v46  ;;  %v2095_v46 = vld [vmem:[#allocation8 + $0x10] sm:$0xff]  ;;  %v2094_v47 = vld [vmem:[#allocation8 + $0x8] sm:$0xff] }
 0x9be   : > { %v1708_v50 = vsel %vm484_vm2, %v1704_v49, 0.0  ;;  %v1703_v51 = vmax.f32 %v1701_v48, 0.0  ;;  %v1723_v9 = vmul.f32 %v1722_v4, %v1701_v48  ;;  %v2093_v48 = vld [vmem:[#allocation8] sm:$0xff] }
 0x9bf   : > { %1709 = vadd.xlane.f32.xlu0 %v1708_v50 }
 0x9c0   : > { %v1705_v52 = vsel %vm484_vm2, %v1703_v51, 0.0 }
 0x9c1   : > { %1706 = vadd.xlane.f32.xlu1 %v1705_v52 }
 0x9d2   : > { %1820 = vrot.lane.b32.xlu1 %v3130_v21, %s2925_s14 }
 0x9d5   : > { %1729 = vrot.lane.b32.xlu0 %v3133_v22, %s2924_s7 }
 0x9d6   : > { %1814 = vrot.lane.b32.xlu1 %v3124_v19, %s2926_s27 }
 0x9d9   : > { %1818 = vrot.lane.b32.xlu0 %v3124_v19, %s2925_s14 }
 0x9dd   : > { %1816 = vrot.lane.b32.xlu0 %v3130_v21, %s2926_s27  ;;  %v1719_v21 = vstv %s2377_s15 }
 0xa48   : > { %v1710_v54 = vpop.xlane.xlu0 %1709 }
 0xa49   : > { %v1712_v61 = vadd.f32 1e-08, %v1710_v54 }
 0xa4a   : > { %v1707_v62 = vpop.xlane.xlu1 %1706 }
 0xa4b   : > { %2726 = vrcp.f32 %v1712_v61  ;;  %v1711_v63 = vadd.f32 1e-08, %v1707_v62 }
 0xa4c   : > { %v1730_v0 = vpop.permute.xlu0 %1729 }
 0xa4d   : > { %2728 = vrcp.f32 %v1711_v63  ;;  %2564 = vmatprep.subr.mxu0 %v1730_v0 }
 0xa4e   : > { %2565 = vmatpush3.msra.mxu0 %v1730_v0  ;;  %v1821_v1 = vpop.permute.xlu1 %1820 }
 0xa4f   : > { %2566 = vmatprep.subr.mxu0 %v1728_v53 }
 0xa50   : > { %2567 = vmatpush3.msra.mxu0 %v1728_v53  ;;  %v1819_v15 = vpop.permute.xlu0 %1818 }
 0xa51   : > { %2571 = vmatprep.subr.msk.mxu0 %vm396_vm1, %v1821_v1 }
 0xa52   : > { %v1815_v14 = vpop.permute.xlu1 %1814 }
 0xa54   : > { %v1817_v16 = vpop.permute.xlu0 %1816 }
 0xa58   : > { %v2727_v19 = vpop.eup %2726 }
 0xa59   : > { %v1716_v2 = vmul.f32 %v2727_v19, %v1704_v49 }
 0xa5a   : > { %v2729_v3 = vpop.eup %2728 }
 0xa5b   : > { %v1714_v7 = vmul.f32 %v2729_v3, %v1703_v51  ;;  %v1721_v8 = vmul.f32 %v1719_v21, %v1716_v2 }
 0xa5d   : > { %v1720_v10 = vmul.f32 %v1719_v21, %v1714_v7  ;;  %v1726_v13 = vadd.f32 %v1724_v11, %v1721_v8 }
 0xa5f   : > { %v1725_v12 = vadd.f32 %v1723_v9, %v1720_v10 }
 0xa61   : > { %2568 = vmatprep.mubr.msk.f32.mxu0 %vm484_vm2, %v1725_v12 }
 0xa62   : > { %2569 = vmatmul.mubr.msk.f32.vlgmr.msra.gmra.mxu0 %vm484_vm2, %v1726_v13 }
 0xa63   : > { %2572 = vmatpush3.xpose.msk.msra.mxu0 %vm396_vm1, %v1821_v1  ;;  %2575 = vmatprep.mubr.msk.f32.mxu0 %vm396_vm1, %v1815_v14 }
 0xa64   : > { %2573 = vmatprep.subr.msk.mxu0 %vm396_vm1, %v1819_v15 }
 0xa67   : > { %2574 = vmatpush3.xpose.msk.msra.mxu0 %vm396_vm1, %v1819_v15 }
 0xa6a   : > { %2576 = vmatmul.mubr.msk.f32.vlgmr.msra.gmra.mxu0 %vm396_vm1, %v1817_v16 }
 0xb22   : > { %v2570_v17 = vpop.f32.mrf.mxu0 }
 0xb24   : > { %v1805_v18 = vpop.f32.mrf.mxu0 }
 0xb2a   : > { %v2577_v23 = vpop.f32.mrf.mxu0 }
 0xb2b   : > { %v1906_v24 = vmul.f32 0.35355338, %v2577_v23  ;;  %v2389_v23 = vld [vmem:[%s3432_s3] ss:$0 sm:$0xff] }
 0xb2c   : > { %v1896_v25 = vpop.f32.mrf.mxu0 }
 0xb2d   : > { %v1905_v26 = vmul.f32 0.35355338, %v1896_v25  ;;  %v1908_v27 = vmax.f32 %v1906_v24, 0.0 }
 0xb2f   : > { %v1907_v28 = vmax.f32 %v1905_v26, 0.0  ;;  %v1912_v29 = vsel %vm484_vm2, %v1908_v27, 0.0 }
 0xb30   : > { %1913 = vadd.xlane.f32.xlu0 %v1912_v29 }
 0xb31   : > { %v1909_v30 = vsel %vm484_vm2, %v1907_v28, 0.0 }
 0xb32   : > { %1910 = vadd.xlane.f32.xlu1 %v1909_v30 }
 0xb43   : > { %1931 = vrot.lane.b32.xlu1 %v3128_v20, %s2926_s27 }
 0xb46   : > { %1933 = vrot.lane.b32.xlu0 %v3133_v22, %s2926_s27 }
 0xb47   : > { %2020 = vrot.lane.b32.xlu1 %v3228_v56, %s2925_s14 }
 0xb4a   : > { %2022 = vrot.lane.b32.xlu0 %v3226_v55, %s2925_s14 }
 0xb4b   : > { %2028 = vrot.lane.b32.xlu1 %v3232_v60, %s2923_s8 }
 0xb4e   : > { %2030 = vrot.lane.b32.xlu0 %v3230_v59, %s2923_s8  ;;  %s2398_s8 = sshll.u32 %s2980_s22, 8  ;;  %s2927_s22 = smov [#allocation10]  }
 0xb4f   : > { %2036 = vrot.lane.b32.xlu1 %v3258_v32, %s2921_s30  ;;  %s3384_s24 = scalar_lea.hbm %s3434_s5, %s2398_s8  ;;  %s2833_s15 = sshll.u32 %s2927_s22, 4  ;;  %s2834_s15 = int_to_ptr.vmem [resolvable:$false] %s2833_s15 }
 0xb50   : > { %s2835_s10 = scalar_lea.vmem %s2834_s15, 512 }
 0xb52   : > { %2038 = vrot.lane.b32.xlu0 %v3256_v31, %s2921_s30  ;;  %s2386_s30 = sld [smem:[#allocation9 + $0xf]] }
 0xb53   : > { %2044 = vrot.lane.b32.xlu1 %v3284_v6, %s2919_s28 }
 0xb56   : > { %2046 = vrot.lane.b32.xlu0 %v3282_v5, %s2919_s28  ;;  %s2385_s28 = sld [smem:[#allocation9 + $0x7]] }
 0xb57   : > { %2052 = vrot.lane.b32.xlu1 %v3310_v44, %s2917_s16  ;;  %v2097_v44 = vld [vmem:[#allocation8 + $0x20] sm:$0xff] }
 0xb58   : > { %v1926_v33 = vstv %s2386_s30 }
 0xb59   : > { %v1927_v36 = vmul.f32 %v1926_v33, %v1905_v26  ;;  %v1928_v38 = vmul.f32 %v1926_v33, %v1906_v24 }
 0xb5a   : > { %2054 = vrot.lane.b32.xlu0 %v3308_v43, %s2917_s16  ;;  %v2098_v43 = vld [vmem:[#allocation8 + $0x28] sm:$0xff]  ;;  %s285_s16 = scalar_lea.vmem [#allocation10], %s2319_s13  ;;  %s2192_s13 = scalar_lea.sflag [#allocation4], %s3100_s11 }
 0xb5b   : > { %2060 = vrot.lane.b32.xlu1 %v1805_v18, %s2915_s17  ;;  %s2205_s23 = sshll.u32 %s285_s16, 4  ;;  %s3378_s23 = int_to_ptr.vmem [resolvable:$true] %s2205_s23 }
 0xb5c   : > { %v1923_v5 = vstv %s2385_s28  ;;  %s2829_s27 = scalar_lea.vmem %s3378_s23, 256  ;;  %p2836_p1 = scmp.lt.s32.totalorder %s3378_s23, %s2834_s15 }
 0xb5d   : > { %p2830_p12 = scmp.ne.s32.totalorder %s3378_s23, %s2829_s27  ;;  %p2837_p2 = scmp.lt.s32.totalorder %s2835_s10, %s2829_s27 }
 0xb5e   : > { %2062 = vrot.lane.b32.xlu0 %v2570_v17, %s2915_s17 }
 0xb5f   : > { %p2831_p5 = pnand %p2830_p12, %p3454_p0  ;;  %p2838_p3 = por %p2837_p2, %p2836_p1 }
 0xb61   : > { %p2832_p10 = pneg %p2831_p5 }
 0xb63   : > { %p2839_p9 = pnand %p2838_p3, %p2832_p10 }
 0xbb9   : > { %v1914_v20 = vpop.xlane.xlu0 %1913 }
 0xbba   : > { %v1916_v22 = vadd.f32 1e-08, %v1914_v20 }
 0xbbb   : > { %v1911_v55 = vpop.xlane.xlu1 %1910 }
 0xbbc   : > { %2730 = vrcp.f32 %v1916_v22  ;;  %v1915_v56 = vadd.f32 1e-08, %v1911_v55 }
 0xbbd   : > { %v1934_v59 = vpop.permute.xlu0 %1933 }
 0xbbe   : > { %2732 = vrcp.f32 %v1915_v56  ;;  %2578 = vmatprep.subr.mxu1 %v1934_v59 }
 0xbbf   : > { %2579 = vmatpush3.msra.mxu1 %v1934_v59  ;;  %v1932_v60 = vpop.permute.xlu1 %1931 }
 0xbc0   : > { %2580 = vmatprep.subr.mxu1 %v1932_v60 }
 0xbc1   : > { %2581 = vmatpush3.msra.mxu1 %v1932_v60  ;;  %v2023_v51 = vpop.permute.xlu0 %2022 }
 0xbc2   : > { %2585 = vmatprep.subr.mxu1 %v2100_v41  ;;  %v2075_v3 = vsel %vm396_vm1, %v3178_v57, %v2023_v51 }
 0xbc3   : > { %v2021_v52 = vpop.permute.xlu1 %2020 }
 0xbc4   : > { %v2074_v2 = vsel %vm396_vm1, %v3180_v58, %v2021_v52 }
 0xbc5   : > { %v2031_v53 = vpop.permute.xlu0 %2030 }
 0xbc6   : > { %v2077_v8 = vsel %vm484_vm2, %v2075_v3, %v2031_v53 }
 0xbc7   : > { %v2029_v54 = vpop.permute.xlu1 %2028 }
 0xbc8   : > { %v2076_v4 = vsel %vm484_vm2, %v2074_v2, %v2029_v54 }
 0xbc9   : > { %v2731_v31 = vpop.eup %2730  ;;  %v2039_v61 = vpop.permute.xlu0 %2038 }
 0xbca   : > { %v1920_v32 = vmul.f32 %v2731_v31, %v1908_v27  ;;  %v2080_v10 = vsel %vm2078_vm3, %v2077_v8, %v2039_v61 }
 0xbcb   : > { %v2733_v6 = vpop.eup %2732  ;;  %v2037_v62 = vpop.permute.xlu1 %2036 }
 0xbcc   : > { %v1918_v34 = vmul.f32 %v2733_v6, %v1907_v28  ;;  %v1925_v35 = vmul.f32 %v1923_v5, %v1920_v32  ;;  %v2079_v9 = vsel %vm2078_vm3, %v2076_v4, %v2037_v62 }
 0xbcd   : > { %v2047_v63 = vpop.permute.xlu0 %2046 }
 0xbce   : > { %v1924_v37 = vmul.f32 %v1923_v5, %v1918_v34  ;;  %v1930_v40 = vadd.f32 %v1928_v38, %v1925_v35  ;;  %v2083_v12 = vsel %vm2081_vm4, %v2080_v10, %v2047_v63 }
 0xbcf   : > { %v2045_v0 = vpop.permute.xlu1 %2044 }
 0xbd0   : > { %v1929_v39 = vadd.f32 %v1927_v36, %v1924_v37  ;;  %v2082_v11 = vsel %vm2081_vm4, %v2079_v9, %v2045_v0 }
 0xbd1   : > { %v2055_v1 = vpop.permute.xlu0 %2054 }
 0xbd2   : > { %2582 = vmatprep.mubr.msk.f32.mxu1 %vm484_vm2, %v1929_v39  ;;  %v2086_v14 = vsel %vm2084_vm5, %v2083_v12, %v2055_v1 }
 0xbd3   : > { %2583 = vmatmul.mubr.msk.f32.vlgmr.msra.gmra.mxu1 %vm484_vm2, %v1930_v40  ;;  %v2053_v19 = vpop.permute.xlu1 %2052 }
 0xbd4   : > { %2586 = vmatpush3.msra.mxu1 %v2100_v41  ;;  %v2085_v58 = vsel %vm2084_vm5, %v2082_v11, %v2053_v19 }
 0xbd5   : > { %2587 = vmatprep.subr.mxu1 %v2099_v42  ;;  %v2063_v21 = vpop.permute.xlu0 %2062 }
 0xbd6   : > { %2588 = vmatpush3.msra.mxu1 %v2099_v42  ;;  %v2089_v16 = vsel %vm2087_vm6, %v2086_v14, %v2063_v21 }
 0xbd7   : > { %2589 = vmatprep.subr.mxu1 %v2098_v43  ;;  %v2061_v7 = vpop.permute.xlu1 %2060 }
 0xbd8   : > { %2590 = vmatpush3.msra.mxu1 %v2098_v43  ;;  %v2088_v15 = vsel %vm2087_vm6, %v2085_v58, %v2061_v7 }
 0xbd9   : > { %2591 = vmatprep.subr.mxu1 %v2097_v44 }
 0xbda   : > { %2592 = vmatpush3.msra.mxu1 %v2097_v44 }
 0xbdb   : > { %2593 = vmatprep.subr.mxu1 %v2096_v45 }
 0xbdc   : > { %2594 = vmatpush3.msra.mxu1 %v2096_v45 }
 0xbdd   : > { %2595 = vmatprep.subr.mxu1 %v2095_v46 }
 0xbde   : > { %2596 = vmatpush3.msra.mxu1 %v2095_v46 }
 0xbdf   : > { %2597 = vmatprep.subr.mxu1 %v2094_v47 }
 0xbe0   : > { %2598 = vmatpush3.msra.mxu1 %v2094_v47 }
 0xbe1   : > { %2599 = vmatprep.subr.mxu1 %v2093_v48 }
 0xbe2   : > { %2600 = vmatpush3.msra.mxu1 %v2093_v48 }
 0xc93   : > { %v2584_v49 = vpop.f32.mrf.mxu1 }
 0xc94   : > { %2070 = vrot.lane.b32.xlu0 %v2584_v49, %s2913_s26 }
 0xc95   : > { %v2009_v50 = vpop.f32.mrf.mxu1 }
 0xc96   : > { %2068 = vrot.lane.b32.xlu1 %v2009_v50, %s2913_s26 }
 0xd06   : > { %v2071_v13 = vpop.permute.xlu0 %2070 }
 0xd07   : > { %v2092_v18 = vsel %vm2090_vm7, %v2089_v16, %v2071_v13 }
 0xd08   : > { %v2069_v57 = vpop.permute.xlu1 %2068 }
 0xd09   : > { %v2091_v17 = vsel %vm2090_vm7, %v2088_v15, %v2069_v57 }
 0xd0a   : > { %2601 = vmatprep.mubr.msk.f32.mxu1 %vm306_vm0, %v2091_v17 }
 0xd0b   : > { %2602 = vmatmul.mubr.msk.f32.vlgmr.msra.gmra.mxu1 %vm306_vm0, %v2092_v18 }
 0xdcb   : > { %v2603_v24 = vpop.f32.mrf.mxu1 }
 0xdcc   : > { %v2186_v25 = vadd.f32 %v2603_v24, %v2389_v23 }
 0xdcd   : > { %v2180_v26 = vpop.f32.mrf.mxu1 }
 0xdce   : > { %2190 = vst.msk [vmem:[%s285_s16 + $0x8] sm:$0xff] %vm306_vm0, %v2186_v25  ;;  %v2181_v27 = vadd.f32 %v2389_v23, %v2180_v26 }
 0xdd0   : > { %2189 = vst.msk [vmem:[%s285_s16] sm:$0xff] %vm306_vm0, %v2181_v27 }
 0xdd1   : > { %2842 = shalt.err (!%p2839_p9)
}
 0xdd2   : > { %s2843_s28 = scalar_lea.hbm %s3384_s24, 256  ;;  %s2847_s17 = scalar_lea.hbm %s3434_s5, 512 }
 0xdd3   : > { %p2844_p7 = scmp.ne.s32.totalorder %s3384_s24, %s2843_s28  ;;  %p2848_p6 = scmp.lt.s32.totalorder %s3384_s24, %s3434_s5 }
 0xdd4   : > { %p2849_p11 = scmp.lt.s32.totalorder %s2847_s17, %s2843_s28 }
 0xdd5   : > { %p2845_p4 = pnand %p2844_p7, %p3454_p0 }
 0xdd6   : > { %p2850_p13 = por %p2849_p11, %p2848_p6 }
 0xdd7   : > { %p2846_p8 = pneg %p2845_p4 }
 0xdd9   : > { %p2851_p12 = pnand %p2850_p13, %p2846_p8 }
 0xddb   : > { %2854 = shalt.err (!%p2851_p12)
}
 0xddc   : > { %s2928_s7 = smov 128  }
 0xddd   : > { %2618 = dma.vmem_to_hbm [thread:$0]  (%p3454_p0), %s3378_s23, 256, %s3384_s24, %s2192_s13, %s2928_s7, %s2928_s7, %s2925_s14  }
 0xdde PF: > { %s2220_s12 = sand.u32 1, %s2889_s18   ;;  %p3455_p5 = scmp.ne.s32.totalorder %s3441_s25, 0 }
 0xddf   : > { %p3456_p10 = scmp.ge.s32.totalorder %s2901_s21, 2  ;;  %s2221_s27 = scalar_lea.sflag [#allocation4], %s2220_s12 }
 0xde1   : > { %p2635_p1 = pnand %p3456_p10, %p3455_p5 }
 0xde3   : > { %p2636_p2 = pneg %p2635_p1 }
 0xde5   : > { %2884 = dma.done.wait (%p2636_p2), %s2221_s27, 256  }
 0xde6   : > { %2886 = vsyncadd (%p2636_p2), %s2221_s27, 4294967040  ;;  %p20_p3 = scmp.ge.s32.totalorder %s3042_s6, 4   ;;  %s3457_s18 = smov %s2893_s19 }
 0xde7   : > { %s3458_s19 = smov %s2897_s20  ;;  %s3459_s20 = smov %s3052_s29 }
 0xde8   : > { %s3460_s21 = smov %s3042_s6  ;;  %22 = sbr.rel (!%p20_p3) target bundleno = 7 (0x7), region = 98 }
 0xded   :  { %2226 = vsyncpa [#allocation3], 1 }
 0xdee   :  { %2228 = vsyncpa [#allocation3 + $0x1], 1 }
 0xdef   :  { %2229 = vsyncpa [#allocation7], 1 }
 0xdf0   :  { %2230 = vsyncpa [#allocation4], 1 }
 0xdf1   :  { %2232 = vsyncpa [#allocation4 + $0x1], 1 }
 0xdf2   :  { %2233 = vsyncpa [#allocation5], 1 }
 0xdf3   :  { %2235 = vsyncpa [#allocation5 + $0x1], 1 }

</bundles_post_ra>
